<compile_context>
chip_gen: v7x
topology: tpu7x:2x2x1
jax: 0.10.0
libtpu: 0.0.40
codegen_flags: <defaults>
</compile_context>

<pallas_src>
import jax
import jax.numpy as jnp
from jax.experimental import pallas as pl
from jax.experimental.pallas import tpu as pltpu


# ----------------------------------------------------------------------------------
# Kernel: one grid step == one decode time step.  h/c carried in VMEM scratch.
# ----------------------------------------------------------------------------------
def _decoder_step_kernel(enc_ref,       # (Bp, P, Ep)  bf16, resident (const index_map)
                         encatt_ref,    # (Bp, P, Ap)  bf16, resident
                         emb_ref,       # (1, Bp, Mp)  bf16, streamed per step
                         wdec_ref,      # (D, Ap)      bf16, resident
                         bdec_ref,      # (1, Ap)      f32
                         wfull_ref,     # (1, Ap)      f32
                         wih_e_ref,     # (Mp, G4)     bf16
                         wih_c_ref,     # (Ep, G4)     bf16
                         whh_ref,       # (D, G4)      bf16
                         bgate_ref,     # (1, G4)      f32 (b_ih + b_hh pre-summed)
                         h_out_ref,     # (1, Bp, D)   f32, streamed per step
                         h_sc, c_sc):   # (Bp, D)      f32 scratch (recurrent state)
    t = pl.program_id(0)
    D = h_sc.shape[1]

    @pl.when(t == 0)
    def _():
        h_sc[...] = jnp.zeros_like(h_sc)   # init_hidden_state: zeros
        c_sc[...] = jnp.zeros_like(c_sc)

    h = h_sc[...]                                                        # (Bp, D) f32
    c = c_sc[...]

    # ---------------- Attention (encoder projection precomputed in wrapper) --------
    dec_att = (jnp.dot(h.astype(jnp.bfloat16), wdec_ref[...],
                       preferred_element_type=jnp.float32)
               + bdec_ref[...])                                          # (Bp, Ap) f32
    # Elementwise path kept in f32 (safe on v5e; bf16 residency still halves vld traffic).
    act = jnp.maximum(encatt_ref[...].astype(jnp.float32)
                      + dec_att[:, None, :], 0.0)                        # (Bp, P, Ap)
    # full_att: VPU multiply + lane reduce (width-1 output, not worth the MXU).
    # Its bias is constant over pixels and cancels exactly in the softmax.
    att = jnp.sum(act * wfull_ref[...], axis=-1)                         # (Bp, P)
    att = att - jnp.max(att, axis=1, keepdims=True)
    e = jnp.exp(att)
    alpha = e * pl.reciprocal(jnp.sum(e, axis=1, keepdims=True), approx=True)
    # context: VPU broadcast-multiply + cross-sublane reduce over pixels
    # (avoids an M=1 batched dot_general that degenerates to per-batch matvecs).
    context = jnp.sum(alpha[:, :, None] * enc_ref[...].astype(jnp.float32),
                      axis=1)                                            # (Bp, Ep) f32

    # ---------------- LSTMCell (pre-split W_ih: no per-step concat relayout) -------
    gates = (jnp.dot(emb_ref[0], wih_e_ref[...], preferred_element_type=jnp.float32)
             + jnp.dot(context.astype(jnp.bfloat16), wih_c_ref[...],
                       preferred_element_type=jnp.float32)
             + jnp.dot(h.astype(jnp.bfloat16), whh_ref[...],
                       preferred_element_type=jnp.float32)
             + bgate_ref[...])                                           # (Bp, G4) f32
    i_g = jax.nn.sigmoid(gates[:, 0 * D:1 * D])
    f_g = jax.nn.sigmoid(gates[:, 1 * D:2 * D])
    g_g = jnp.tanh(gates[:, 2 * D:3 * D])
    o_g = jax.nn.sigmoid(gates[:, 3 * D:4 * D])
    c_new = f_g * c + i_g * g_g
    h_new = o_g * jnp.tanh(c_new)

    h_sc[...] = h_new
    c_sc[...] = c_new
    h_out_ref[0] = h_new                                                 # (Bp, D)


# ----------------------------------------------------------------------------------
# Wrapper: layout plumbing, padding, hoisted projections, pallas_call.
# ----------------------------------------------------------------------------------
def _round_up(x, m):
    return (x + m - 1) // m * m


def _pad_axis(x, axis, target):
    pad = target - x.shape[axis]
    if pad == 0:
        return x
    widths = [(0, 0)] * x.ndim
    widths[axis] = (0, pad)
    return jnp.pad(x, widths)


def _pick_vmem_limit(request_bytes):
    """Generation-aware VMEM compiler limit (leave headroom under physical capacity)."""
    cap = 64 * 1024 * 1024
    try:
        cap = int(pltpu.get_tpu_info().vmem_capacity_bytes)
    except Exception:
        pass
    ceiling = (cap * 3) // 4
    want = max(int(request_bytes), 32 * 1024 * 1024)
    return int(max(min(want, ceiling), 16 * 1024 * 1024))


def decoder_with_attention_forward(encoder_features, captions, params):
    """encoder_features: (B, E, H, W) f32 (NCHW), captions: (B, S) int32.
    Returns outputs (B, S, vocab_size) f32, matching the PyTorch module (eval mode)."""
    B, E, H, W = encoder_features.shape
    P = H * W
    S = captions.shape[1]
    embed = params["embedding"].shape[1]
    A = params["wenc_t"].shape[1]
    D = params["whh_t"].shape[0]
    V = params["wfc_t"].shape[1]

    Bp = _round_up(B, 8)              # sublanes
    Ap = _round_up(A, 128)            # lanes
    Ep = _round_up(E, 128)
    Mp = _round_up(embed, 128)
    G4 = _round_up(4 * D, 128)        # only the concatenated gate width is lane-padded

    bf16 = jnp.bfloat16
    f32 = jnp.float32

    # Layout once (XLA side): NCHW -> (B, P, E); hoist the time-invariant projection.
    enc = encoder_features.reshape(B, E, P).transpose(0, 2, 1)            # (B, P, E)
    enc_att = jnp.einsum('bpe,ea->bpa', enc, params["wenc_t"]) + params["benc"]

    enc_p = _pad_axis(_pad_axis(enc, 0, Bp), 2, Ep).astype(bf16)          # (Bp, P, Ep)
    enc_att_p = _pad_axis(_pad_axis(enc_att, 0, Bp), 2, Ap).astype(bf16)  # (Bp, P, Ap)

    emb = params["embedding"][captions]                                   # (B, S, embed)
    emb = jnp.transpose(emb, (1, 0, 2))                                   # (S, B, embed)
    emb_p = _pad_axis(_pad_axis(emb, 1, Bp), 2, Mp).astype(bf16)          # (S, Bp, Mp)

    wdec_p = _pad_axis(params["wdec_t"], 1, Ap).astype(bf16)              # (D, Ap)
    bdec_p = _pad_axis(params["bdec"], 1, Ap).astype(f32)                 # (1, Ap)
    # full_att weight as a row vector; its bias cancels in the softmax and is dropped.
    wfull_p = _pad_axis(params["wfull_t"].T, 1, Ap).astype(f32)           # (1, Ap)

    # Pre-split W_ih (embedding rows vs. context rows); zero-pad rows and the 4*D width.
    wih_e_p = _pad_axis(_pad_axis(params["wih_t"][:embed], 0, Mp), 1, G4).astype(bf16)
    wih_c_p = _pad_axis(_pad_axis(params["wih_t"][embed:], 0, Ep), 1, G4).astype(bf16)
    whh_p = _pad_axis(params["whh_t"], 1, G4).astype(bf16)                # (D, G4)
    bgate_p = _pad_axis(params["bih"] + params["bhh"], 1, G4).astype(f32)  # (1, G4)

    def const_spec(x):
        n = x.ndim
        return pl.BlockSpec(x.shape, lambda t, _n=n: (0,) * _n)

    in_specs = [
        const_spec(enc_p),
        const_spec(enc_att_p),
        pl.BlockSpec((1, Bp, Mp), lambda t: (t, 0, 0)),   # emb streamed per step
        const_spec(wdec_p),
        const_spec(bdec_p),
        const_spec(wfull_p),
        const_spec(wih_e_p),
        const_spec(wih_c_p),
        const_spec(whh_p),
        const_spec(bgate_p),
    ]
    out_spec = pl.BlockSpec((1, Bp, D), lambda t: (t, 0, 0))

    # Estimate the resident footprint (x2 for pipeline buffering) for the VMEM limit.
    resident = sum(int(a.size) * a.dtype.itemsize
                   for a in (enc_p, enc_att_p, wdec_p, bdec_p, wfull_p,
                             wih_e_p, wih_c_p, whh_p, bgate_p))
    streamed = 2 * (Bp * Mp * 2 + Bp * D * 4)      # double-buffered emb + h blocks
    scratch = 2 * Bp * D * 4
    vmem_limit = _pick_vmem_limit(2 * resident + streamed + scratch)

    hidden = pl.pallas_call(
        _decoder_step_kernel,
        out_shape=jax.ShapeDtypeStruct((S, Bp, D), f32),
        grid_spec=pltpu.PrefetchScalarGridSpec(
            num_scalar_prefetch=0,
            grid=(S,),
            in_specs=in_specs,
            out_specs=out_spec,
            scratch_shapes=[pltpu.VMEM((Bp, D), f32),
                            pltpu.VMEM((Bp, D), f32)]),
        compiler_params=pltpu.CompilerParams(
            dimension_semantics=("arbitrary",),
            vmem_limit_bytes=vmem_limit),
    )(enc_p, enc_att_p, emb_p,
      wdec_p, bdec_p, wfull_p,
      wih_e_p, wih_c_p, whh_p, bgate_p)

    # Vocab projection hoisted out of the recurrence: one (B*S, D) x (D, V) matmul.
    # TODO(synk): nn.Dropout(0.5) is treated as identity (eval-mode semantics).
    h_bs = jnp.transpose(hidden, (1, 0, 2))[:B]                           # (B, S, D)
    logits = h_bs.reshape(B * S, D) @ params["wfc_t"] + params["bfc"]     # (B*S, V)
    return logits.reshape(B, S, V)


# ----------------------------------------------------------------------------------
# Deterministic synthetic parameters with the module's shapes.
# ----------------------------------------------------------------------------------
def init_params(key, *, embed_size, attention_dim, decoder_dim, vocab_size,
                encoder_dim):
    ks = jax.random.split(key, 16)

    def xavier(k, fan_in, fan_out):
        limit = jnp.sqrt(6.0 / (fan_in + fan_out))
        return jax.random.uniform(k, (fan_in, fan_out), jnp.float32, -limit, limit)

    def uni(k, shape, bound):
        return jax.random.uniform(k, shape, jnp.float32, -bound, bound)

    lstm_in = embed_size + encoder_dim
    kb = 1.0 / jnp.sqrt(decoder_dim)
    return {
        # Attention (xavier-uniform weights, default nn.Linear biases)
        "wenc_t": xavier(ks[0], encoder_dim, attention_dim),
        "benc": uni(ks[1], (1, attention_dim), 1.0 / jnp.sqrt(encoder_dim)),
        "wdec_t": xavier(ks[2], decoder_dim, attention_dim),
        "bdec": uni(ks[3], (1, attention_dim), 1.0 / jnp.sqrt(decoder_dim)),
        "wfull_t": xavier(ks[4], attention_dim, 1),
        "bfull": uni(ks[5], (1, 1), 1.0 / jnp.sqrt(attention_dim)),  # cancels in softmax
        # Embedding
        "embedding": jax.random.normal(ks[6], (vocab_size, embed_size), jnp.float32),
        # LSTMCell (PyTorch gate order i, f, g, o)
        "wih_t": uni(ks[7], (lstm_in, 4 * decoder_dim), kb),
        "bih": uni(ks[8], (1, 4 * decoder_dim), kb),
        "whh_t": uni(ks[9], (decoder_dim, 4 * decoder_dim), kb),
        "bhh": uni(ks[10], (1, 4 * decoder_dim), kb),
        # fc
        "wfc_t": uni(ks[11], (decoder_dim, vocab_size), kb),
        "bfc": uni(ks[12], (1, vocab_size), kb),
    }


if __name__ == "__main__":
    # Small shapes consistent with the module.
    B, H, W = 2, 4, 4
    encoder_dim = 256
    embed_size = 32
    attention_dim = 32
    decoder_dim = 32
    vocab_size = 64
    seq_len = 8

    key = jax.random.PRNGKey(0)
    k_enc, k_cap, k_par = jax.random.split(key, 3)

    encoder_features = jax.random.normal(
        k_enc, (B, encoder_dim, H, W), jnp.float32)              # NCHW like PyTorch
    captions = jax.random.randint(k_cap, (B, seq_len), 0, vocab_size, dtype=jnp.int32)
    params = init_params(k_par, embed_size=embed_size, attention_dim=attention_dim,
                         decoder_dim=decoder_dim, vocab_size=vocab_size,
                         encoder_dim=encoder_dim)

    fwd = jax.jit(decoder_with_attention_forward)
    outputs = fwd(encoder_features, captions, params)
    jax.block_until_ready(outputs)
    assert outputs.shape == (B, seq_len, vocab_size), outputs.shape
    print("KERNEL_OK")
</pallas_src>

<mosaic_0001>
module attributes {stable_mosaic.version = 11 : i64} {
  func.func @_decoder_step_kernel(%arg0: i32, %arg1: memref<8x16x256xbf16, #tpu.memory_space<vmem>>, %arg2: memref<8x16x128xbf16, #tpu.memory_space<vmem>>, %arg3: memref<1x8x128xbf16, #tpu.memory_space<vmem>>, %arg4: memref<32x128xbf16, #tpu.memory_space<vmem>>, %arg5: memref<1x128xf32, #tpu.memory_space<vmem>>, %arg6: memref<1x128xf32, #tpu.memory_space<vmem>>, %arg7: memref<128x128xbf16, #tpu.memory_space<vmem>>, %arg8: memref<256x128xbf16, #tpu.memory_space<vmem>>, %arg9: memref<32x128xbf16, #tpu.memory_space<vmem>>, %arg10: memref<1x128xf32, #tpu.memory_space<vmem>>, %arg11: memref<1x8x32xf32, #tpu.memory_space<vmem>>, %arg12: memref<8x32xf32, #tpu.memory_space<vmem>>, %arg13: memref<8x32xf32, #tpu.memory_space<vmem>>) attributes {dimension_semantics = [#tpu.dimension_semantics<arbitrary>], iteration_bounds = array<i64: 8>, scalar_prefetch = 0 : i64, scratch_operands = 2 : i64, tpu.core_type = #tpu.core_type<tc>, window_params = [{pipeline_mode = #tpu.pipeline_mode<synchronous>, transform_indices = @transform_0, window_bounds = array<i64: 8, 16, 256>}, {pipeline_mode = #tpu.pipeline_mode<synchronous>, transform_indices = @transform_1, window_bounds = array<i64: 8, 16, 128>}, {transform_indices = @transform_2, window_bounds = array<i64: 1, 8, 128>}, {pipeline_mode = #tpu.pipeline_mode<synchronous>, transform_indices = @transform_3, window_bounds = array<i64: 32, 128>}, {pipeline_mode = #tpu.pipeline_mode<synchronous>, transform_indices = @transform_4, window_bounds = array<i64: 1, 128>}, {pipeline_mode = #tpu.pipeline_mode<synchronous>, transform_indices = @transform_5, window_bounds = array<i64: 1, 128>}, {pipeline_mode = #tpu.pipeline_mode<synchronous>, transform_indices = @transform_6, window_bounds = array<i64: 128, 128>}, {pipeline_mode = #tpu.pipeline_mode<synchronous>, transform_indices = @transform_7, window_bounds = array<i64: 256, 128>}, {pipeline_mode = #tpu.pipeline_mode<synchronous>, transform_indices = @transform_8, window_bounds = array<i64: 32, 128>}, {pipeline_mode = #tpu.pipeline_mode<synchronous>, transform_indices = @transform_9, window_bounds = array<i64: 1, 128>}, {transform_indices = @transform_10, window_bounds = array<i64: 1, 8, 32>}]} {
    %c0_i32 = arith.constant 0 : i32
    %0 = arith.cmpi eq, %arg0, %c0_i32 : i32
    %1 = arith.extui %0 : i1 to i32
    %c0_i32_0 = arith.constant 0 : i32
    %2 = arith.cmpi ne, %1, %c0_i32_0 : i32
    scf.if %2 {
      %cst_45 = arith.constant 0.000000e+00 : f32
      %84 = vector.broadcast %cst_45 : f32 to vector<8x32xf32>
      %c0_46 = arith.constant 0 : index
      %c0_47 = arith.constant 0 : index
      %85 = vector.load %arg12[%c0_46, %c0_47] : memref<8x32xf32, #tpu.memory_space<vmem>>, vector<8x32xf32>
      tpu.vector_store %arg12[%c0_46, %c0_47], %84 {strides = array<i32>} : memref<8x32xf32, #tpu.memory_space<vmem>>, vector<8x32xf32>,
      %cst_48 = arith.constant 0.000000e+00 : f32
      %86 = vector.broadcast %cst_48 : f32 to vector<8x32xf32>
      %c0_49 = arith.constant 0 : index
      %c0_50 = arith.constant 0 : index
      %87 = vector.load %arg13[%c0_49, %c0_50] : memref<8x32xf32, #tpu.memory_space<vmem>>, vector<8x32xf32>
      tpu.vector_store %arg13[%c0_49, %c0_50], %86 {strides = array<i32>} : memref<8x32xf32, #tpu.memory_space<vmem>>, vector<8x32xf32>,
    } else {
    }
    %c0 = arith.constant 0 : index
    %c0_1 = arith.constant 0 : index
    %3 = vector.load %arg12[%c0, %c0_1] : memref<8x32xf32, #tpu.memory_space<vmem>>, vector<8x32xf32>
    %c0_2 = arith.constant 0 : index
    %c0_3 = arith.constant 0 : index
    %4 = vector.load %arg13[%c0_2, %c0_3] : memref<8x32xf32, #tpu.memory_space<vmem>>, vector<8x32xf32>
    %5 = arith.truncf %3 : vector<8x32xf32> to vector<8x32xbf16>
    %c0_4 = arith.constant 0 : index
    %c0_5 = arith.constant 0 : index
    %6 = vector.load %arg4[%c0_4, %c0_5] : memref<32x128xbf16, #tpu.memory_space<vmem>>, vector<32x128xbf16>
    %cst = arith.constant dense<0.000000e+00> : vector<8x128xf32>
    %7 = tpu.matmul %5, %6, %cst {dimension_numbers = #tpu.dot_dimension_numbers<[1], [0], [0], [1], [0, 0, 1, 1], [], []>} : vector<8x32xbf16>, vector<32x128xbf16>, vector<8x128xf32> -> vector<8x128xf32>
    %c0_6 = arith.constant 0 : index
    %c0_7 = arith.constant 0 : index
    %8 = vector.load %arg5[%c0_6, %c0_7] : memref<1x128xf32, #tpu.memory_space<vmem>>, vector<1x128xf32>
    %9 = vector.broadcast %8 : vector<1x128xf32> to vector<8x128xf32>
    %10 = arith.addf %7, %9 : vector<8x128xf32>
    %c0_8 = arith.constant 0 : index
    %c0_9 = arith.constant 0 : index
    %c0_10 = arith.constant 0 : index
    %11 = vector.load %arg2[%c0_8, %c0_9, %c0_10] : memref<8x16x128xbf16, #tpu.memory_space<vmem>>, vector<8x16x128xbf16>
    %12 = arith.extf %11 : vector<8x16x128xbf16> to vector<8x16x128xf32>
    %13 = vector.shape_cast %10 : vector<8x128xf32> to vector<8x1x128xf32>
    %14 = vector.broadcast %13 : vector<8x1x128xf32> to vector<8x16x128xf32>
    %15 = arith.addf %12, %14 : vector<8x16x128xf32>
    %cst_11 = arith.constant 0.000000e+00 : f32
    %16 = vector.broadcast %cst_11 : f32 to vector<8x16x128xf32>
    %17 = arith.maximumf %15, %16 : vector<8x16x128xf32>
    %c0_12 = arith.constant 0 : index
    %c0_13 = arith.constant 0 : index
    %18 = vector.load %arg6[%c0_12, %c0_13] : memref<1x128xf32, #tpu.memory_space<vmem>>, vector<1x128xf32>
    %19 = vector.shape_cast %18 : vector<1x128xf32> to vector<1x1x128xf32>
    %20 = vector.broadcast %19 : vector<1x1x128xf32> to vector<8x16x128xf32>
    %21 = arith.mulf %17, %20 : vector<8x16x128xf32>
    %cst_14 = arith.constant dense<0.000000e+00> : vector<8x16xf32>
    %22 = vector.multi_reduction <add>, %21, %cst_14 [2] : vector<8x16x128xf32> to vector<8x16xf32>
    %cst_15 = arith.constant dense<0xFF800000> : vector<8xf32>
    %23 = vector.multi_reduction <maximumf>, %22, %cst_15 [1] : vector<8x16xf32> to vector<8xf32>
    %24 = vector.shape_cast %23 : vector<8xf32> to vector<8x1xf32>
    %25 = vector.broadcast %24 : vector<8x1xf32> to vector<8x16xf32>
    %26 = arith.subf %22, %25 : vector<8x16xf32>
    %27 = math.exp %26 : vector<8x16xf32>
    %cst_16 = arith.constant dense<0.000000e+00> : vector<8xf32>
    %28 = vector.multi_reduction <add>, %27, %cst_16 [1] : vector<8x16xf32> to vector<8xf32>
    %29 = vector.shape_cast %28 : vector<8xf32> to vector<8x1xf32>
    %30 = tpu.reciprocal %29 {approx = true} : vector<8x1xf32> -> vector<8x1xf32>
    %31 = vector.broadcast %30 : vector<8x1xf32> to vector<8x16xf32>
    %32 = arith.mulf %27, %31 : vector<8x16xf32>
    %33 = vector.shape_cast %32 : vector<8x16xf32> to vector<8x16x1xf32>
    %c0_17 = arith.constant 0 : index
    %c0_18 = arith.constant 0 : index
    %c0_19 = arith.constant 0 : index
    %34 = vector.load %arg1[%c0_17, %c0_18, %c0_19] : memref<8x16x256xbf16, #tpu.memory_space<vmem>>, vector<8x16x256xbf16>
    %35 = arith.extf %34 : vector<8x16x256xbf16> to vector<8x16x256xf32>
    %36 = vector.broadcast %33 : vector<8x16x1xf32> to vector<8x16x256xf32>
    %37 = arith.mulf %36, %35 : vector<8x16x256xf32>
    %cst_20 = arith.constant dense<0.000000e+00> : vector<8x256xf32>
    %38 = vector.multi_reduction <add>, %37, %cst_20 [1] : vector<8x16x256xf32> to vector<8x256xf32>
    %c0_21 = arith.constant 0 : index
    %c0_22 = arith.constant 0 : index
    %c0_23 = arith.constant 0 : index
    %39 = vector.load %arg3[%c0_21, %c0_22, %c0_23] : memref<1x8x128xbf16, #tpu.memory_space<vmem>>, vector<1x8x128xbf16>
    %40 = vector.shape_cast %39 : vector<1x8x128xbf16> to vector<8x128xbf16>
    %c0_24 = arith.constant 0 : index
    %c0_25 = arith.constant 0 : index
    %41 = vector.load %arg7[%c0_24, %c0_25] : memref<128x128xbf16, #tpu.memory_space<vmem>>, vector<128x128xbf16>
    %cst_26 = arith.constant dense<0.000000e+00> : vector<8x128xf32>
    %42 = tpu.matmul %40, %41, %cst_26 {dimension_numbers = #tpu.dot_dimension_numbers<[1], [0], [0], [1], [0, 0, 1, 1], [], []>} : vector<8x128xbf16>, vector<128x128xbf16>, vector<8x128xf32> -> vector<8x128xf32>
    %43 = arith.truncf %38 : vector<8x256xf32> to vector<8x256xbf16>
    %c0_27 = arith.constant 0 : index
    %c0_28 = arith.constant 0 : index
    %44 = vector.load %arg8[%c0_27, %c0_28] : memref<256x128xbf16, #tpu.memory_space<vmem>>, vector<256x128xbf16>
    %cst_29 = arith.constant dense<0.000000e+00> : vector<8x128xf32>
    %45 = tpu.matmul %43, %44, %cst_29 {dimension_numbers = #tpu.dot_dimension_numbers<[1], [0], [0], [1], [0, 0, 1, 1], [], []>} : vector<8x256xbf16>, vector<256x128xbf16>, vector<8x128xf32> -> vector<8x128xf32>
    %46 = arith.addf %42, %45 : vector<8x128xf32>
    %47 = arith.truncf %3 : vector<8x32xf32> to vector<8x32xbf16>
    %c0_30 = arith.constant 0 : index
    %c0_31 = arith.constant 0 : index
    %48 = vector.load %arg9[%c0_30, %c0_31] : memref<32x128xbf16, #tpu.memory_space<vmem>>, vector<32x128xbf16>
    %cst_32 = arith.constant dense<0.000000e+00> : vector<8x128xf32>
    %49 = tpu.matmul %47, %48, %cst_32 {dimension_numbers = #tpu.dot_dimension_numbers<[1], [0], [0], [1], [0, 0, 1, 1], [], []>} : vector<8x32xbf16>, vector<32x128xbf16>, vector<8x128xf32> -> vector<8x128xf32>
    %50 = arith.addf %46, %49 : vector<8x128xf32>
    %c0_33 = arith.constant 0 : index
    %c0_34 = arith.constant 0 : index
    %51 = vector.load %arg10[%c0_33, %c0_34] : memref<1x128xf32, #tpu.memory_space<vmem>>, vector<1x128xf32>
    %52 = vector.broadcast %51 : vector<1x128xf32> to vector<8x128xf32>
    %53 = arith.addf %50, %52 : vector<8x128xf32>
    %54 = vector.extract_strided_slice %53 {offsets = [0, 0], sizes = [8, 32], strides = [1, 1]} : vector<8x128xf32> to vector<8x32xf32>
    %55 = arith.negf %54 : vector<8x32xf32>
    %56 = math.exp %55 : vector<8x32xf32>
    %cst_35 = arith.constant 1.000000e+00 : f32
    %57 = vector.broadcast %cst_35 : f32 to vector<8x32xf32>
    %58 = arith.addf %57, %56 : vector<8x32xf32>
    %59 = arith.divf %57, %58 : vector<8x32xf32>
    %60 = vector.extract_strided_slice %53 {offsets = [0, 32], sizes = [8, 32], strides = [1, 1]} : vector<8x128xf32> to vector<8x32xf32>
    %61 = arith.negf %60 : vector<8x32xf32>
    %62 = math.exp %61 : vector<8x32xf32>
    %cst_36 = arith.constant 1.000000e+00 : f32
    %63 = vector.broadcast %cst_36 : f32 to vector<8x32xf32>
    %64 = arith.addf %63, %62 : vector<8x32xf32>
    %65 = arith.divf %63, %64 : vector<8x32xf32>
    %66 = vector.extract_strided_slice %53 {offsets = [0, 64], sizes = [8, 32], strides = [1, 1]} : vector<8x128xf32> to vector<8x32xf32>
    %67 = math.tanh %66 : vector<8x32xf32>
    %68 = vector.extract_strided_slice %53 {offsets = [0, 96], sizes = [8, 32], strides = [1, 1]} : vector<8x128xf32> to vector<8x32xf32>
    %69 = arith.negf %68 : vector<8x32xf32>
    %70 = math.exp %69 : vector<8x32xf32>
    %cst_37 = arith.constant 1.000000e+00 : f32
    %71 = vector.broadcast %cst_37 : f32 to vector<8x32xf32>
    %72 = arith.addf %71, %70 : vector<8x32xf32>
    %73 = arith.divf %71, %72 : vector<8x32xf32>
    %74 = arith.mulf %65, %4 : vector<8x32xf32>
    %75 = arith.mulf %59, %67 : vector<8x32xf32>
    %76 = arith.addf %74, %75 : vector<8x32xf32>
    %77 = math.tanh %76 : vector<8x32xf32>
    %78 = arith.mulf %73, %77 : vector<8x32xf32>
    %c0_38 = arith.constant 0 : index
    %c0_39 = arith.constant 0 : index
    %79 = vector.load %arg12[%c0_38, %c0_39] : memref<8x32xf32, #tpu.memory_space<vmem>>, vector<8x32xf32>
    tpu.vector_store %arg12[%c0_38, %c0_39], %78 {strides = array<i32>} : memref<8x32xf32, #tpu.memory_space<vmem>>, vector<8x32xf32>,
    %c0_40 = arith.constant 0 : index
    %c0_41 = arith.constant 0 : index
    %80 = vector.load %arg13[%c0_40, %c0_41] : memref<8x32xf32, #tpu.memory_space<vmem>>, vector<8x32xf32>
    tpu.vector_store %arg13[%c0_40, %c0_41], %76 {strides = array<i32>} : memref<8x32xf32, #tpu.memory_space<vmem>>, vector<8x32xf32>,
    %c0_42 = arith.constant 0 : index
    %c0_43 = arith.constant 0 : index
    %c0_44 = arith.constant 0 : index
    %81 = vector.load %arg11[%c0_42, %c0_43, %c0_44] : memref<1x8x32xf32, #tpu.memory_space<vmem>>, vector<1x8x32xf32>
    %82 = vector.shape_cast %81 : vector<1x8x32xf32> to vector<8x32xf32>
    %83 = vector.shape_cast %78 : vector<8x32xf32> to vector<1x8x32xf32>
    tpu.vector_store %arg11[%c0_42, %c0_43, %c0_44], %83 {strides = array<i32>} : memref<1x8x32xf32, #tpu.memory_space<vmem>>, vector<1x8x32xf32>,
    return
  }
  func.func @transform_0(%arg0: i32) -> (i32, i32, i32) {
    %c0_i32 = arith.constant 0 : i32
    %c0_i32_0 = arith.constant 0 : i32
    %c0_i32_1 = arith.constant 0 : i32
    %c0_i32_2 = arith.constant 0 : i32
    return %c0_i32, %c0_i32_0, %c0_i32_1 : i32, i32, i32
  }
  func.func @transform_1(%arg0: i32) -> (i32, i32, i32) {
    %c0_i32 = arith.constant 0 : i32
    %c0_i32_0 = arith.constant 0 : i32
    %c0_i32_1 = arith.constant 0 : i32
    %c0_i32_2 = arith.constant 0 : i32
    return %c0_i32, %c0_i32_0, %c0_i32_1 : i32, i32, i32
  }
  func.func @transform_2(%arg0: i32) -> (i32, i32, i32) {
    %c0_i32 = arith.constant 0 : i32
    %c0_i32_0 = arith.constant 0 : i32
    %c0_i32_1 = arith.constant 0 : i32
    return %arg0, %c0_i32, %c0_i32_0 : i32, i32, i32
  }
  func.func @transform_3(%arg0: i32) -> (i32, i32) {
    %c0_i32 = arith.constant 0 : i32
    %c0_i32_0 = arith.constant 0 : i32
    %c0_i32_1 = arith.constant 0 : i32
    return %c0_i32, %c0_i32_0 : i32, i32
  }
  func.func @transform_4(%arg0: i32) -> (i32, i32) {
    %c0_i32 = arith.constant 0 : i32
    %c0_i32_0 = arith.constant 0 : i32
    %c0_i32_1 = arith.constant 0 : i32
    return %c0_i32, %c0_i32_0 : i32, i32
  }
  func.func @transform_5(%arg0: i32) -> (i32, i32) {
    %c0_i32 = arith.constant 0 : i32
    %c0_i32_0 = arith.constant 0 : i32
    %c0_i32_1 = arith.constant 0 : i32
    return %c0_i32, %c0_i32_0 : i32, i32
  }
  func.func @transform_6(%arg0: i32) -> (i32, i32) {
    %c0_i32 = arith.constant 0 : i32
    %c0_i32_0 = arith.constant 0 : i32
    %c0_i32_1 = arith.constant 0 : i32
    return %c0_i32, %c0_i32_0 : i32, i32
  }
  func.func @transform_7(%arg0: i32) -> (i32, i32) {
    %c0_i32 = arith.constant 0 : i32
    %c0_i32_0 = arith.constant 0 : i32
    %c0_i32_1 = arith.constant 0 : i32
    return %c0_i32, %c0_i32_0 : i32, i32
  }
  func.func @transform_8(%arg0: i32) -> (i32, i32) {
    %c0_i32 = arith.constant 0 : i32
    %c0_i32_0 = arith.constant 0 : i32
    %c0_i32_1 = arith.constant 0 : i32
    return %c0_i32, %c0_i32_0 : i32, i32
  }
  func.func @transform_9(%arg0: i32) -> (i32, i32) {
    %c0_i32 = arith.constant 0 : i32
    %c0_i32_0 = arith.constant 0 : i32
    %c0_i32_1 = arith.constant 0 : i32
    return %c0_i32, %c0_i32_0 : i32, i32
  }
  func.func @transform_10(%arg0: i32) -> (i32, i32, i32) {
    %c0_i32 = arith.constant 0 : i32
    %c0_i32_0 = arith.constant 0 : i32
    %c0_i32_1 = arith.constant 0 : i32
    return %arg0, %c0_i32, %c0_i32_0 : i32, i32, i32
  }
}

</mosaic_0001>

<bundles_post_ra>
// kernel: decoder_with_attention_forward.1
= control target key start
LH: loop header
LB: loop body
LE: loop exit
PB: predicated region body
PF: predicated region fallthrough
CT: control target
= control target key end

     0   :  { %s2130_s13 = smov 0   ;;  %s2672_s0 = inlined_call_operand.vmem [shape: bf16[8,16,256], index: 0, kind: input, shape index: {}]   ;;  %s2673_s1 = inlined_call_operand.vmem [shape: bf16[8,16,128], index: 1, kind: input, shape index: {}]   ;;  %s2674_s2 = inlined_call_operand.vmem [shape: bf16[8,8,128], index: 2, kind: input, shape index: {}]   ;;  %s2675_s3 = inlined_call_operand.vmem [shape: bf16[32,128], index: 3, kind: input, shape index: {}]   ;;  %s2676_s4 = inlined_call_operand.vmem [shape: f32[1,128], index: 4, kind: input, shape index: {}]   ;;  %s2677_s5 = inlined_call_operand.vmem [shape: f32[1,128], index: 5, kind: input, shape index: {}]   ;;  %s2678_s6 = inlined_call_operand.vmem [shape: bf16[128,128], index: 6, kind: input, shape index: {}]   ;;  %s2679_s7 = inlined_call_operand.vmem [shape: bf16[256,128], index: 7, kind: input, shape index: {}]   ;;  %s2680_s8 = inlined_call_operand.vmem [shape: bf16[32,128], index: 8, kind: input, shape index: {}]   ;;  %s2681_s9 = inlined_call_operand.vmem [shape: f32[1,128], index: 9, kind: input, shape index: {}]   ;;  %s2682_s10 = inlined_call_operand.vmem [shape: f32[8,8,32], index: 10, kind: output, shape index: {}]  }
   0x1 LB: > { %s1815_s14 = sadd.s32 4294967295, %s2065_s13   ;;  %p1819_p0 = scmp.ge.s32.totalorder %s2065_s13, 1  ;;  %s2065_s13 = sphi %s2130_s13, %s20_s13  }
   0x2   : > { %p311_p1 = scmp.lt.s32.totalorder %s2065_s13, 9 }
   0x4   : > { %p312_p2 = pnand %p1819_p0, %p311_p1 }
   0x5   : > { %p347_p3 = scmp.lt.s32.totalorder (!%p312_p2), %s1815_s14, 7  ;;  %p1822_p4 = scmp.ne.s32.totalorder (!%p312_p2), %s1815_s14, 0 }
   0x6   : > { %315 = sbr.rel (%p312_p2) target bundleno = 1843 (0x733), region = 60 }
   0xd   : > { %s348_s15 = scalar_select %p347_p3, %s1815_s14, 7 }
   0xe   : > { %359 = sbr.rel (%p1822_p4) target bundleno = 21 (0x15), region = 64  ;;  %vm360_vm0 = vcmask (!%p1822_p4), 261120   ;;  %v2067_v0 = vmov (!%p1822_p4), 0.0  }
   0xf   : > { %s1820_s16 = sshll.u32 %s348_s15, 2  ;;  %s1821_s17 = sshll.u32 %s348_s15, 3  ;;  %361 = vst.msk [vmem:[#allocation2] sm:$0xff] (!%p1822_p4), %vm360_vm0, %v2067_v0  ;;  %362 = vst.msk [vmem:[#allocation3] sm:$0xff] (!%p1822_p4), %vm360_vm0, %v2067_v0 }
  0x10   : > { %s2141_s20 = scalar_lea.vmem %s2674_s2, %s1820_s16  ;;  %s2146_s23 = scalar_lea.vmem %s2682_s10, %s1821_s17 }
  0x15 PF: > { %v1989_v1 = vld [vmem:[%s2675_s3] sm:$0xff]   ;;  %v2068_v2 = vmov 0.0   ;;  %v1990_v3 = vld [vmem:[%s2675_s3 + $0x8] sm:$0xff]   ;;  %vm2069_vm1 = vmmov 0   ;;  %vm389_vm2 = vcmask 261120   ;;  %v470_v8 = vlaneseq  ;;  %v1892_v28 = vld [vmem:[%s2673_s1 + $0x10] sm:$0xff]  }
  0x16   : > { %1935 = vmatprep.subr.bf16.mxu0 %v2068_v2  ;;  %1939 = vmatprep.mubr.msk.bf16.mxu0 %vm2069_vm1, %v2068_v2  ;;  %v363_v4 = vld [vmem:[#allocation2] sm:$0xff]  ;;  %v2070_v6 = vmov 1966171168   ;;  %v1891_v26 = vld [vmem:[%s2673_s1 + $0x8] sm:$0xff]   ;;  %v1869_v38 = vunpack.c.l.bf16 %v1892_v28  ;;  %v1870_v43 = vunpack.c.h.bf16 %v1892_v28  ;;  %v1893_v49 = vld [vmem:[%s2673_s1 + $0x18] sm:$0xff]   ;;  %vm669_vm3 = vcmask 130112  }
  0x17   : > { %1936 = vmatpush3.bf16.msra.mxu0 %v1989_v1  ;;  %v2158_v5 = vpack.c.bf16 %v363_v4, %v363_v4  ;;  %v468_v7 = vunpack.c.l.s4 %v2070_v6  ;;  %v2166_v10 = vshrl.u32 %v470_v8, 7  ;;  %v1823_v11 = vld [vmem:[%s2676_s4] ss:$0 sm:$0xff]  ;;  %v1865_v32 = vunpack.c.l.bf16 %v1891_v26  ;;  %v1895_v61 = vld [vmem:[%s2673_s1 + $0x28] sm:$0xff]   ;;  %s2072_s26 = smov 32   ;;  %s2073_s14 = smov 64  }
  0x18   : > { %1937 = vmatprep.subr.bf16.mxu0 %v2068_v2  ;;  %v1860_v16 = vld [vmem:[%s2673_s1] sm:$0xff]   ;;  %v1866_v34 = vunpack.c.h.bf16 %v1891_v26  ;;  %v1873_v56 = vunpack.c.l.bf16 %v1893_v49  ;;  %v1881_v4 = vunpack.c.l.bf16 %v1895_v61  ;;  %vm734_vm4 = vcmask 1041409   ;;  %s2074_s15 = smov 96  }
  0x19   : > { %v469_v9 = vunpack.c.0.s8 %v468_v7  ;;  %v2176_v21 = vsub.s32 0, %v2166_v10  ;;  %v1861_v22 = vunpack.c.l.bf16 %v1860_v16  ;;  %v1862_v27 = vunpack.c.h.bf16 %v1860_v16  ;;  %v1894_v35 = vld [vmem:[%s2673_s1 + $0x20] sm:$0xff]  }
  0x1a   : > { %v2192_v40 = vld [vmem:[%s2677_s5] ss:$0 sm:$0xff]  ;;  %v1877_v44 = vunpack.c.l.bf16 %v1894_v35  ;;  %v1878_v55 = vunpack.c.h.bf16 %v1894_v35  ;;  %vm736_vm5 = vcmask 1042434   ;;  %vm738_vm6 = vcmask 1043459  }
  0x1b   : > { %1938 = vmatpush3.bf16.msra.mxu0 %v1990_v3  ;;  %v472_v12 = vsub.s32 %v469_v9, %v2166_v10  ;;  %v1874_v3 = vunpack.c.h.bf16 %v1893_v49  ;;  %vm740_vm7 = vcmask 1044484   ;;  %vm742_vm8 = vcmask 1045509  }
  0x1c   : > { %1943 = vmatprep.subr.bf16.mxu0 %v2068_v2  ;;  %vm744_vm9 = vcmask 1046534   ;;  %vm746_vm10 = vcmask 1047559   ;;  %vm749_vm11 = vcmask 130048  }
  0x1e   : > { %1940 = vmatmul.mubr.msk.bf16.vlgmr.msra.gmra.mrb[0].mxu0 %vm389_vm2, %v2158_v5 }
  0x1f   : > { %1959 = vmatprep.mubr.msk.bf16.mxu0 %vm2069_vm1, %v2068_v2 }
  0xf1   : > { %v427_v13 = vpop.f32.mrb[0].mxu0 }
  0xf2   : > { %v428_v14 = vadd.f32 %v1823_v11, %v427_v13  ;;  %v1941_v15 = vpop.f32.mrb[1].mxu0  ;;  %v1896_v13 = vld [vmem:[%s2673_s1 + $0x30] sm:$0xff]  }
  0xf3   : > { %v430_v17 = vpop.f32.mrb[2].mxu0 }
  0xf4   : > { %v466_v18 = vcombine.high %v428_v14, %v428_v14  ;;  %v473_v19 = vrot.slane %v428_v14, %v472_v12  ;;  %v1942_v20 = vpop.f32.mrb[3].mxu0 }
  0xf6   : > { %v480_v23 = vrot.slane %v466_v18, %v472_v12  ;;  %v481_v24 = vcombine.high %v473_v19, %v473_v19  ;;  %v489_v25 = vrot.slane %v473_v19, %v472_v12  ;;  %v1885_v18 = vunpack.c.l.bf16 %v1896_v13 }
  0xf8   : > { %v511_v29 = vcombine.high %v489_v25, %v489_v25  ;;  %v518_v30 = vrot.slane %v489_v25, %v2176_v21  ;;  %v496_v31 = vrot.slane %v480_v23, %v472_v12  ;;  %v503_v33 = vrot.slane %v481_v24, %v472_v12 }
  0xf9   : > { %v482_v45 = vcombine.high %v480_v23, %v480_v23 }
  0xfa   : > { %v555_v36 = vadd.f32 %v1861_v22, %v518_v30  ;;  %v556_v37 = vadd.f32 %v1862_v27, %v518_v30  ;;  %v526_v39 = vrot.slane %v511_v29, %v2176_v21  ;;  %v522_v41 = vrot.slane %v503_v33, %v2176_v21  ;;  %v1897_v27 = vld [vmem:[%s2673_s1 + $0x38] sm:$0xff]  }
  0xfb   : > { %v534_v48 = vrot.slane %v496_v31, %v2176_v21  ;;  %v513_v53 = vcombine.high %v503_v33, %v503_v33  ;;  %v510_v1 = vrot.slane %v482_v45, %v472_v12  ;;  %v512_v17 = vcombine.high %v496_v31, %v496_v31 }
  0xfc   : > { %v571_v42 = vmax.f32 %v555_v36, 0.0  ;;  %v557_v46 = vadd.f32 %v1865_v32, %v522_v41  ;;  %v558_v47 = vadd.f32 %v1866_v34, %v522_v41  ;;  %v572_v51 = vmax.f32 %v556_v37, 0.0 }
  0xfd   : > { %v559_v52 = vadd.f32 %v1869_v38, %v526_v39  ;;  %v560_v59 = vadd.f32 %v1870_v43, %v526_v39  ;;  %v563_v60 = vadd.f32 %v1877_v44, %v534_v48  ;;  %v530_v0 = vrot.slane %v513_v53, %v2176_v21 }
  0xfe   : > { %v594_v50 = vmul.f32 %v2192_v40, %v571_v42  ;;  %v573_v54 = vmax.f32 %v557_v46, 0.0  ;;  %v574_v58 = vmax.f32 %v558_v47, 0.0  ;;  %v595_v62 = vmul.f32 %v2192_v40, %v572_v51 }
  0xff   : > { %v575_v63 = vmax.f32 %v559_v52, 0.0  ;;  %v576_v7 = vmax.f32 %v560_v59, 0.0  ;;  %v579_v9 = vmax.f32 %v563_v60, 0.0  ;;  %v564_v11 = vadd.f32 %v1878_v55, %v534_v48 }
 0x100   : > { %610 = vadd.xlane.f32.xlu0 %v594_v50  ;;  %v596_v57 = vmul.f32 %v2192_v40, %v573_v54  ;;  %v597_v6 = vmul.f32 %v2192_v40, %v574_v58  ;;  %v561_v15 = vadd.f32 %v1873_v56, %v530_v0  ;;  %v538_v16 = vrot.slane %v510_v1, %v2176_v21 }
 0x101   : > { %v598_v14 = vmul.f32 %v2192_v40, %v575_v63  ;;  %v1882_v12 = vunpack.c.h.bf16 %v1895_v61  ;;  %v599_v19 = vmul.f32 %v2192_v40, %v576_v7  ;;  %v602_v20 = vmul.f32 %v2192_v40, %v579_v9 }
 0x102   : > { %614 = vadd.xlane.f32.xlu1 %v596_v57  ;;  %v580_v22 = vmax.f32 %v564_v11, 0.0  ;;  %v562_v23 = vadd.f32 %v1874_v3, %v530_v0  ;;  %v577_v24 = vmax.f32 %v561_v15, 0.0  ;;  %v565_v25 = vadd.f32 %v1881_v4, %v538_v16 }
 0x103   : > { %v542_v26 = vrot.slane %v512_v17, %v2176_v21  ;;  %v514_v28 = vcombine.high %v510_v1, %v510_v1  ;;  %v1886_v29 = vunpack.c.h.bf16 %v1896_v13  ;;  %v566_v32 = vadd.f32 %v1882_v12, %v538_v16 }
 0x104   : > { %612 = vadd.xlane.f32.xlu0 %v595_v62  ;;  %v603_v30 = vmul.f32 %v2192_v40, %v580_v22  ;;  %v578_v31 = vmax.f32 %v562_v23, 0.0  ;;  %v1889_v33 = vunpack.c.l.bf16 %v1897_v27  ;;  %v600_v34 = vmul.f32 %v2192_v40, %v577_v24 }
 0x105   : > { %v581_v35 = vmax.f32 %v565_v25, 0.0  ;;  %v567_v36 = vadd.f32 %v1885_v18, %v542_v26  ;;  %v546_v37 = vrot.slane %v514_v28, %v2176_v21  ;;  %v582_v39 = vmax.f32 %v566_v32, 0.0 }
 0x106   : > { %616 = vadd.xlane.f32.xlu1 %v597_v6  ;;  %v601_v38 = vmul.f32 %v2192_v40, %v578_v31  ;;  %v568_v41 = vadd.f32 %v1886_v29, %v542_v26  ;;  %v1890_v42 = vunpack.c.h.bf16 %v1897_v27  ;;  %v659_v61 = vand.u32 127, %v470_v8 }
 0x107   : > { %v604_v43 = vmul.f32 %v2192_v40, %v581_v35  ;;  %v583_v44 = vmax.f32 %v567_v36, 0.0  ;;  %v569_v45 = vadd.f32 %v1889_v33, %v546_v37  ;;  %v605_v46 = vmul.f32 %v2192_v40, %v582_v39 }
 0x108   : > { %618 = vadd.xlane.f32.xlu0 %v598_v14  ;;  %v584_v47 = vmax.f32 %v568_v41, 0.0  ;;  %v570_v48 = vadd.f32 %v1890_v42, %v546_v37  ;;  %v664_v63 = vadd.s32 4294967288, %v659_v61  ;;  %v2253_v4 = vsub.s32 %v659_v61, %v2166_v10 }
 0x109   : > { %v606_v49 = vmul.f32 %v2192_v40, %v583_v44  ;;  %v585_v50 = vmax.f32 %v569_v45, 0.0  ;;  %v764_v61 = vsub.s32 2, %v2166_v10 }
 0x10a   : > { %620 = vadd.xlane.f32.xlu1 %v599_v19  ;;  %v607_v51 = vmul.f32 %v2192_v40, %v584_v47  ;;  %v586_v52 = vmax.f32 %v570_v48, 0.0  ;;  %v2248_v1 = vsub.s32 %v664_v63, %v2166_v10  ;;  %v2071_v47 = vmov 0  }
 0x10b   : > { %v608_v53 = vmul.f32 %v2192_v40, %v585_v50  ;;  %1988 = vset.pattern.permute.xlu0 %v2071_v47  ;;  %1987 = vset.pattern.permute.xlu1 %v2071_v47  ;;  %v760_v48 = vsub.s32 1, %v2166_v10 }
 0x10c   : > { %626 = vadd.xlane.f32.xlu0 %v602_v20  ;;  %v609_v54 = vmul.f32 %v2192_v40, %v586_v52  ;;  %v776_v52 = vsub.s32 5, %v2166_v10 }
 0x10e   : > { %628 = vadd.xlane.f32.xlu1 %v603_v30 }
 0x110   : > { %622 = vadd.xlane.f32.xlu0 %v600_v34 }
 0x112   : > { %624 = vadd.xlane.f32.xlu1 %v601_v38 }
 0x114   : > { %630 = vadd.xlane.f32.xlu0 %v604_v43 }
 0x116   : > { %632 = vadd.xlane.f32.xlu1 %v605_v46 }
 0x118   : > { %634 = vadd.xlane.f32.xlu0 %v606_v49 }
 0x11a   : > { %636 = vadd.xlane.f32.xlu1 %v607_v51 }
 0x11c   : > { %638 = vadd.xlane.f32.xlu0 %v608_v53 }
 0x11e   : > { %640 = vadd.xlane.f32.xlu1 %v609_v54 }
 0x18d   : > { %v2228_v55 = vpop.xlane.xlu0 %610 }
 0x18e   : > { %v663_v16 = vrot.slane %v2228_v55, %v2253_v4 }
 0x18f   : > { %v2230_v56 = vpop.xlane.xlu1 %614 }
 0x190   : > { %v674_v9 = vrot.slane %v2230_v56, %v2253_v4 }
 0x191   : > { %v2232_v57 = vpop.xlane.xlu0 %612 }
 0x192   : > { %v668_v11 = vrot.slane %v2232_v57, %v2248_v1 }
 0x193   : > { %v2234_v58 = vpop.xlane.xlu1 %616 }
 0x194   : > { %v678_v6 = vrot.slane %v2234_v58, %v2248_v1  ;;  %v670_v20 = vsel %vm669_vm3, %v668_v11, %v663_v16 }
 0x195   : > { %v2236_v59 = vpop.xlane.xlu0 %618 }
 0x196   : > { %v683_v14 = vrot.slane %v2236_v59, %v2253_v4  ;;  %v679_v17 = vsel %vm669_vm3, %v678_v6, %v674_v9  ;;  %v780_v6 = vsub.s32 6, %v2166_v10 }
 0x197   : > { %v2238_v60 = vpop.xlane.xlu1 %620  ;;  %v735_v24 = vsel %vm734_vm4, %v679_v17, %v670_v20  ;;  %v768_v17 = vsub.s32 3, %v2166_v10 }
 0x198   : > { %v687_v8 = vrot.slane %v2238_v60, %v2248_v1 }
 0x199   : > { %v2241_v62 = vpop.xlane.xlu0 %626 }
 0x19a   : > { %v688_v19 = vsel %vm669_vm3, %v687_v8, %v683_v14  ;;  %v701_v30 = vrot.slane %v2241_v62, %v2253_v4 }
 0x19b   : > { %v2243_v0 = vpop.xlane.xlu1 %628  ;;  %v737_v27 = vsel %vm736_vm5, %v688_v19, %v735_v24 }
 0x19c   : > { %v705_v25 = vrot.slane %v2243_v0, %v2248_v1 }
 0x19d   : > { %v2245_v40 = vpop.xlane.xlu0 %622 }
 0x19e   : > { %v692_v12 = vrot.slane %v2245_v40, %v2253_v4  ;;  %v706_v35 = vsel %vm669_vm3, %v705_v25, %v701_v30 }
 0x19f   : > { %v2250_v3 = vpop.xlane.xlu1 %624 }
 0x1a0   : > { %v696_v13 = vrot.slane %v2250_v3, %v2248_v1 }
 0x1a1   : > { %v2257_v7 = vpop.xlane.xlu0 %630 }
 0x1a2   : > { %v697_v22 = vsel %vm669_vm3, %v696_v13, %v692_v12  ;;  %v710_v28 = vrot.slane %v2257_v7, %v2253_v4 }
 0x1a3   : > { %v2269_v15 = vpop.xlane.xlu1 %632  ;;  %v739_v31 = vsel %vm738_vm6, %v697_v22, %v737_v27 }
 0x1a4   : > { %v714_v23 = vrot.slane %v2269_v15, %v2248_v1  ;;  %v741_v41 = vsel %vm740_vm7, %v706_v35, %v739_v31 }
 0x1a5   : > { %v2276_v18 = vpop.xlane.xlu0 %634 }
 0x1a6   : > { %v719_v32 = vrot.slane %v2276_v18, %v2253_v4  ;;  %v715_v34 = vsel %vm669_vm3, %v714_v23, %v710_v28 }
 0x1a7   : > { %v2286_v26 = vpop.xlane.xlu1 %636  ;;  %v743_v42 = vsel %vm742_vm8, %v715_v34, %v741_v41 }
 0x1a8   : > { %v723_v29 = vrot.slane %v2286_v26, %v2248_v1 }
 0x1a9   : > { %v2298_v33 = vpop.xlane.xlu0 %638 }
 0x1aa   : > { %v724_v37 = vsel %vm669_vm3, %v723_v29, %v719_v32  ;;  %v728_v38 = vrot.slane %v2298_v33, %v2253_v4 }
 0x1ab   : > { %v2302_v36 = vpop.xlane.xlu1 %640  ;;  %v745_v44 = vsel %vm744_vm9, %v724_v37, %v743_v42 }
 0x1ac   : > { %v732_v39 = vrot.slane %v2302_v36, %v2248_v1 }
 0x1ae   : > { %v733_v43 = vsel %vm669_vm3, %v732_v39, %v728_v38 }
 0x1af   : > { %v747_v45 = vsel %vm746_vm10, %v733_v43, %v745_v44 }
 0x1b0   : > { %v750_v46 = vsel %vm749_vm11, %v747_v45, -inf }
 0x1b1   : > { %751 = vmax.xlane.f32.xlu0 %v750_v46 }
 0x23e   : > { %v752_v49 = vpop.xlane.xlu0 %751 }
 0x23f   : > { %v757_v50 = vrot.slane %v752_v49, %v2176_v21  ;;  %v761_v51 = vrot.slane %v752_v49, %v760_v48  ;;  %v2327_v8 = vrot.slane %v752_v49, %v776_v52  ;;  %v765_v13 = vrot.slane %v752_v49, %v764_v61 }
 0x240   : > { %v769_v23 = vrot.slane %v752_v49, %v768_v17 }
 0x241   : > { %v794_v53 = vsub.f32 %v2228_v55, %v757_v50  ;;  %v795_v54 = vsub.f32 %v2232_v57, %v757_v50  ;;  %v796_v63 = vsub.f32 %v2230_v56, %v761_v51  ;;  %v797_v14 = vsub.f32 %v2234_v58, %v761_v51 }
 0x242   : > { %v784_v57 = vsub.s32 7, %v2166_v10  ;;  %v2335_v56 = vrot.slane %v752_v49, %v780_v6  ;;  %v804_v16 = vsub.f32 %v2257_v7, %v2327_v8  ;;  %v798_v12 = vsub.f32 %v2236_v59, %v765_v13 }
 0x243   : > { %v810_v9 = vmul.f32 1.442695, %v794_v53  ;;  %v812_v11 = vmul.f32 1.442695, %v795_v54  ;;  %v814_v55 = vmul.f32 1.442695, %v796_v63  ;;  %v799_v24 = vsub.f32 %v2238_v60, %v765_v13 }
 0x244   : > { %v816_v19 = vmul.f32 1.442695, %v797_v14  ;;  %v785_v58 = vrot.slane %v752_v49, %v784_v57  ;;  %v806_v20 = vsub.f32 %v2276_v18, %v2335_v56  ;;  %v830_v22 = vmul.f32 1.442695, %v804_v16 }
 0x245   : > { %2017 = vpow2.f32 %v810_v9  ;;  %v818_v7 = vmul.f32 1.442695, %v798_v12  ;;  %v772_v18 = vsub.s32 4, %v2166_v10  ;;  %v800_v29 = vsub.f32 %v2245_v40, %v769_v23  ;;  %v1993_v10 = vld [vmem:[%s2679_s7 + $0x48] sm:$0xff]  }
 0x246   : > { %2019 = vpow2.f32 %v812_v11  ;;  %v808_v59 = vsub.f32 %v2298_v33, %v785_v58  ;;  %v834_v27 = vmul.f32 1.442695, %v806_v20  ;;  %v820_v30 = vmul.f32 1.442695, %v799_v24 }
 0x247   : > { %2021 = vpow2.f32 %v814_v55  ;;  %v773_v32 = vrot.slane %v752_v49, %v772_v18  ;;  %v801_v33 = vsub.f32 %v2250_v3, %v769_v23  ;;  %v822_v34 = vmul.f32 1.442695, %v800_v29 }
 0x248   : > { %2023 = vpow2.f32 %v816_v19  ;;  %v838_v31 = vmul.f32 1.442695, %v808_v59  ;;  %v805_v44 = vsub.f32 %v2269_v15, %v2327_v8  ;;  %v809_v50 = vsub.f32 %v2302_v36, %v785_v58 }
 0x249   : > { %2025 = vpow2.f32 %v830_v22  ;;  %v802_v37 = vsub.f32 %v2241_v62, %v773_v32  ;;  %v824_v38 = vmul.f32 1.442695, %v801_v33  ;;  %v803_v41 = vsub.f32 %v2243_v0, %v773_v32 }
 0x24a   : > { %2027 = vpow2.f32 %v818_v7  ;;  %v807_v0 = vsub.f32 %v2286_v26, %v2335_v56  ;;  %v832_v47 = vmul.f32 1.442695, %v805_v44  ;;  %v840_v53 = vmul.f32 1.442695, %v809_v50 }
 0x24b   : > { %2029 = vpow2.f32 %v834_v27  ;;  %v826_v42 = vmul.f32 1.442695, %v802_v37  ;;  %v828_v45 = vmul.f32 1.442695, %v803_v41 }
 0x24c   : > { %2031 = vpow2.f32 %v820_v30  ;;  %v836_v15 = vmul.f32 1.442695, %v807_v0 }
 0x24d   : > { %2033 = vpow2.f32 %v838_v31 }
 0x24e   : > { %2035 = vpow2.f32 %v822_v34 }
 0x24f   : > { %v2348_v25 = vpop.eup %2017  ;;  %2037 = vpow2.f32 %v824_v38 }
 0x250   : > { %v2351_v28 = vpop.eup %2019  ;;  %859 = vperm.xlu1 %1987, %v2348_v25   ;;  %2039 = vpow2.f32 %v826_v42 }
 0x251   : > { %862 = vperm.xlu0 %1988, %v2351_v28   ;;  %v2357_v60 = vpop.eup %2021  ;;  %2041 = vpow2.f32 %v828_v45 }
 0x252   : > { %v2363_v35 = vpop.eup %2023  ;;  %2043 = vpow2.f32 %v832_v47 }
 0x253   : > { %v2366_v40 = vpop.eup %2025  ;;  %2045 = vpow2.f32 %v836_v15 }
 0x254   : > { %865 = vperm.xlu1 %1987, %v2357_v60   ;;  %v2370_v39 = vpop.eup %2027  ;;  %2047 = vpow2.f32 %v840_v53 }
 0x255   : > { %889 = vperm.xlu0 %1988, %v2366_v40   ;;  %v2373_v3 = vpop.eup %2029 }
 0x256   : > { %v2377_v43 = vpop.eup %2031 }
 0x257   : > { %v2380_v62 = vpop.eup %2033 }
 0x258   : > { %868 = vperm.xlu1 %1987, %v2363_v35   ;;  %v2385_v46 = vpop.eup %2035 }
 0x259   : > { %895 = vperm.xlu0 %1988, %v2373_v3   ;;  %v2390_v49 = vpop.eup %2037 }
 0x25a   : > { %v2394_v51 = vpop.eup %2039 }
 0x25b   : > { %v2397_v54 = vpop.eup %2041 }
 0x25c   : > { %871 = vperm.xlu1 %1987, %v2370_v39   ;;  %v2400_v26 = vpop.eup %2043 }
 0x25d   : > { %901 = vperm.xlu0 %1988, %v2380_v62   ;;  %v2403_v63 = vpop.eup %2045 }
 0x25e   : > { %v2406_v36 = vpop.eup %2047 }
 0x260   : > { %874 = vperm.xlu1 %1987, %v2377_v43  }
 0x264   : > { %877 = vperm.xlu1 %1987, %v2385_v46  }
 0x268   : > { %880 = vperm.xlu1 %1987, %v2390_v49  }
 0x26c   : > { %883 = vperm.xlu1 %1987, %v2394_v51  }
 0x270   : > { %886 = vperm.xlu1 %1987, %v2397_v54  }
 0x274   : > { %892 = vperm.xlu1 %1987, %v2400_v26  }
 0x278   : > { %898 = vperm.xlu1 %1987, %v2403_v63  }
 0x27c   : > { %904 = vperm.xlu1 %1987, %v2406_v36  }
 0x2cf   : > { %v860_v8 = vpop.permute.xlu1 %859 }
 0x2d0   : > { %v863_v56 = vpop.permute.xlu0 %862  ;;  %v909_v59 = vrot.slane %v860_v8, %v2253_v4 }
 0x2d1   : > { %v913_v7 = vrot.slane %v863_v56, %v2248_v1 }
 0x2d3   : > { %v866_v9 = vpop.permute.xlu1 %865  ;;  %v914_v42 = vsel %vm669_vm3, %v913_v7, %v909_v59 }
 0x2d4   : > { %v890_v19 = vpop.permute.xlu0 %889  ;;  %v918_v27 = vrot.slane %v866_v9, %v2253_v4 }
 0x2d5   : > { %v954_v44 = vrot.slane %v890_v19, %v2253_v4 }
 0x2d7   : > { %v869_v11 = vpop.permute.xlu1 %868 }
 0x2d8   : > { %v922_v20 = vrot.slane %v869_v11, %v2248_v1  ;;  %v896_v22 = vpop.permute.xlu0 %895 }
 0x2d9   : > { %v963_v47 = vrot.slane %v896_v22, %v2253_v4 }
 0x2da   : > { %v923_v32 = vsel %vm669_vm3, %v922_v20, %v918_v27 }
 0x2db   : > { %v872_v13 = vpop.permute.xlu1 %871  ;;  %v978_v50 = vsel %vm734_vm4, %v923_v32, %v914_v42  ;;  %v2001_v32 = vld [vmem:[%s2678_s6 + $0x10] sm:$0xff]   ;;  %v2007_v42 = vld [vmem:[%s2678_s6 + $0x20] sm:$0xff]  }
 0x2dc   : > { %v927_v30 = vrot.slane %v872_v13, %v2253_v4  ;;  %v902_v15 = vpop.permute.xlu0 %901 }
 0x2df   : > { %v875_v14 = vpop.permute.xlu1 %874 }
 0x2e0   : > { %v931_v23 = vrot.slane %v875_v14, %v2248_v1 }
 0x2e2   : > { %v932_v37 = vsel %vm669_vm3, %v931_v23, %v927_v30 }
 0x2e3   : > { %v878_v55 = vpop.permute.xlu1 %877  ;;  %v979_v8 = vsel %vm736_vm5, %v932_v37, %v978_v50  ;;  %v2004_v37 = vld [vmem:[%s2678_s6 + $0x18] sm:$0xff]  }
 0x2e4   : > { %v936_v33 = vrot.slane %v878_v55, %v2253_v4  ;;  %v972_v55 = vrot.slane %v902_v15, %v2253_v4  ;;  %v2011_v50 = vld [vmem:[%s2679_s7 + $0x78] sm:$0xff]   ;;  %v2013_v15 = vld [vmem:[%s2678_s6 + $0x30] sm:$0xff]  }
 0x2e7   : > { %v881_v16 = vpop.permute.xlu1 %880 }
 0x2e8   : > { %v940_v29 = vrot.slane %v881_v16, %v2248_v1 }
 0x2ea   : > { %v941_v45 = vsel %vm669_vm3, %v940_v29, %v936_v33  ;;  %v2000_v33 = vld [vmem:[%s2679_s7 + $0x18] sm:$0xff]  }
 0x2eb   : > { %v884_v12 = vpop.permute.xlu1 %883  ;;  %v980_v11 = vsel %vm738_vm6, %v941_v45, %v979_v8  ;;  %v2008_v45 = vld [vmem:[%s2679_s7 + $0x70] sm:$0xff]   ;;  %v364_v8 = vld [vmem:[#allocation3] sm:$0xff] }
 0x2ec   : > { %v945_v38 = vrot.slane %v884_v12, %v2253_v4 }
 0x2ef   : > { %v887_v58 = vpop.permute.xlu1 %886 }
 0x2f0   : > { %v949_v31 = vrot.slane %v887_v58, %v2248_v1 }
 0x2f2   : > { %v950_v53 = vsel %vm669_vm3, %v949_v31, %v945_v38  ;;  %v2003_v38 = vld [vmem:[%s2679_s7 + $0x20] sm:$0xff]  }
 0x2f3   : > { %v893_v24 = vpop.permute.xlu1 %892  ;;  %v981_v56 = vsel %vm740_vm7, %v950_v53, %v980_v11  ;;  %v2012_v53 = vld [vmem:[%s2679_s7 + $0x38] sm:$0xff]   ;;  %v1319_v11 = vld [vmem:[%s2141_s20] sm:$0xf] }
 0x2f4   : > { %v958_v34 = vrot.slane %v893_v24, %v2248_v1 }
 0x2f6   : > { %v959_v9 = vsel %vm669_vm3, %v958_v34, %v954_v44  ;;  %v2002_v34 = vld [vmem:[%s2679_s7 + $0x60] sm:$0xff]   ;;  %v2006_v44 = vld [vmem:[%s2679_s7 + $0x28] sm:$0xff]  }
 0x2f7   : > { %v899_v41 = vpop.permute.xlu1 %898  ;;  %v982_v12 = vsel %vm742_vm8, %v959_v9, %v981_v56  ;;  %v2014_v9 = vld [vmem:[%s2678_s6 + $0x38] sm:$0xff]  }
 0x2f8   : > { %v967_v0 = vrot.slane %v899_v41, %v2248_v1  ;;  %v2005_v41 = vld [vmem:[%s2679_s7 + $0x68] sm:$0xff]  }
 0x2fa   : > { %v968_v13 = vsel %vm669_vm3, %v967_v0, %v963_v47  ;;  %v2010_v0 = vld [vmem:[%s2678_s6 + $0x28] sm:$0xff]   ;;  %v2009_v47 = vld [vmem:[%s2679_s7 + $0x30] sm:$0xff]  }
 0x2fb   : > { %v905_v14 = vpop.permute.xlu1 %904  ;;  %v983_v58 = vsel %vm744_vm9, %v968_v13, %v982_v12 }
 0x2fc   : > { %v976_v16 = vrot.slane %v905_v14, %v2248_v1  ;;  %v1048_v14 = vld [vmem:[%s2672_s0 + $0x8] sm:$0xff] }
 0x2fd   : > { %v1065_v56 = vunpack.c.l.bf16 %v1048_v14  ;;  %v1066_v12 = vunpack.c.h.bf16 %v1048_v14 }
 0x2fe   : > { %v977_v19 = vsel %vm669_vm3, %v976_v16, %v972_v55  ;;  %v1047_v55 = vld [vmem:[%s2672_s0] sm:$0xff] }
 0x2ff   : > { %v984_v20 = vsel %vm746_vm10, %v977_v19, %v983_v58  ;;  %v1063_v19 = vunpack.c.l.bf16 %v1047_v55  ;;  %v1064_v58 = vunpack.c.h.bf16 %v1047_v55 }
 0x300   : > { %v986_v22 = vsel %vm749_vm11, %v984_v20, 0.0 }
 0x301   : > { %987 = vadd.xlane.f32.xlu0 %v986_v22 }
 0x38e   : > { %v988_v23 = vpop.xlane.xlu0 %987 }
 0x38f   : > { %2049 = vrcp.f32 %v988_v23  ;;  %v1050_v23 = vld [vmem:[%s2672_s0 + $0x18] sm:$0xff] }
 0x399   : > { %v2050_v24 = vpop.eup %2049 }
 0x39a   : > { %v1010_v4 = vrot.slane %v2050_v24, %v772_v18  ;;  %v994_v7 = vrot.slane %v2050_v24, %v2176_v21  ;;  %v1022_v27 = vrot.slane %v2050_v24, %v784_v57  ;;  %v998_v31 = vrot.slane %v2050_v24, %v760_v48 }
 0x39c   : > { %v1039_v1 = vmul.f32 %v2394_v51, %v1010_v4  ;;  %v1031_v59 = vmul.f32 %v2348_v25, %v994_v7  ;;  %v1045_v29 = vmul.f32 %v2380_v62, %v1022_v27  ;;  %v1032_v30 = vmul.f32 %v2351_v28, %v994_v7  ;;  %v1049_v7 = vld [vmem:[%s2672_s0 + $0x10] sm:$0xff] }
 0x39d   : > { %v1033_v21 = vmul.f32 %v2357_v60, %v998_v31  ;;  %v1034_v18 = vmul.f32 %v2363_v35, %v998_v31  ;;  %v1002_v25 = vrot.slane %v2050_v24, %v764_v61  ;;  %v1006_v28 = vrot.slane %v2050_v24, %v768_v17 }
 0x39e   : > { %1137 = vperm.xlu0 %1988, %v1039_v1   ;;  %1097 = vperm.xlu1 %1987, %v1031_v59   ;;  %v1040_v35 = vmul.f32 %v2397_v54, %v1010_v4  ;;  %v1014_v61 = vrot.slane %v2050_v24, %v776_v52  ;;  %v1018_v17 = vrot.slane %v2050_v24, %v780_v6  ;;  %v1991_v52 = vld [vmem:[%s2679_s7 + $0x40] sm:$0xff]   ;;  %v1996_v54 = vld [vmem:[%s2679_s7 + $0x50] sm:$0xff]   ;;  %v1069_v59 = vunpack.c.l.bf16 %v1050_v23 }
 0x39f   : > { %v1035_v57 = vmul.f32 %v2370_v39, %v1002_v25  ;;  %v1036_v62 = vmul.f32 %v2377_v43, %v1002_v25  ;;  %v1037_v48 = vmul.f32 %v2385_v46, %v1006_v28  ;;  %v1038_v60 = vmul.f32 %v2390_v49, %v1006_v28  ;;  %1901 = vmatprep.subr.bf16.mxu1 %v1991_v52  ;;  %v1995_v6 = vld [vmem:[%s2678_s6] sm:$0xff]  }
 0x3a0   : > { %v1041_v39 = vmul.f32 %v2366_v40, %v1014_v61  ;;  %v1042_v43 = vmul.f32 %v2400_v26, %v1014_v61  ;;  %v1043_v46 = vmul.f32 %v2373_v3, %v1018_v17  ;;  %v1044_v49 = vmul.f32 %v2403_v63, %v1018_v17  ;;  %v1992_v40 = vld [vmem:[%s2679_s7] sm:$0xff]   ;;  %v1994_v3 = vld [vmem:[%s2679_s7 + $0x8] sm:$0xff]   ;;  %1944 = vmatpush3.bf16.msra.mxu0 %v1995_v6  ;;  %v1997_v63 = vld [vmem:[%s2679_s7 + $0x10] sm:$0xff]  }
 0x3a1   : > { %v1046_v51 = vmul.f32 %v2406_v36, %v1022_v27  ;;  %1902 = vmatpush3.bf16.msra.mxu1 %v1992_v40  ;;  %1945 = vmatprep.subr.bf16.mxu0 %v2068_v2  ;;  %v1998_v26 = vld [vmem:[%s2678_s6 + $0x8] sm:$0xff]   ;;  %v1999_v36 = vld [vmem:[%s2679_s7 + $0x58] sm:$0xff]   ;;  %v1070_v27 = vunpack.c.h.bf16 %v1050_v23  ;;  %v1051_v52 = vld [vmem:[%s2672_s0 + $0x20] sm:$0xff] }
 0x3a2   : > { %1167 = vperm.xlu0 %1988, %v1045_v29   ;;  %1102 = vperm.xlu1 %1987, %v1032_v30   ;;  %v1052_v17 = vld [vmem:[%s2672_s0 + $0x28] sm:$0xff]  ;;  %v1054_v40 = vld [vmem:[%s2672_s0 + $0x38] sm:$0xff] }
 0x3a3   : > { %1903 = vmatprep.subr.bf16.mxu1 %v1993_v10  ;;  %v2581_v10 = vld [vmem:[%s2672_s0 + $0x70] sm:$0xff] }
 0x3a4   : > { %1946 = vmatpush3.bf16.msra.mxu0 %v1998_v26  ;;  %v1053_v26 = vld [vmem:[%s2672_s0 + $0x30] sm:$0xff] }
 0x3a5   : > { %1904 = vmatpush3.bf16.msra.mxu1 %v1994_v3  ;;  %1947 = vmatprep.subr.bf16.mxu0 %v2068_v2 }
 0x3a6   : > { %1107 = vperm.xlu1 %1987, %v1033_v21   ;;  %1905 = vmatprep.subr.bf16.mxu1 %v1996_v54  ;;  %v1067_v21 = vunpack.c.l.bf16 %v1049_v7  ;;  %v1073_v54 = vunpack.c.l.bf16 %v1052_v17 }
 0x3a8   : > { %1948 = vmatpush3.bf16.msra.mxu0 %v2001_v32  ;;  %v1074_v32 = vunpack.c.h.bf16 %v1052_v17 }
 0x3a9   : > { %1906 = vmatpush3.bf16.msra.mxu1 %v1997_v63  ;;  %1949 = vmatprep.subr.bf16.mxu0 %v2068_v2 }
 0x3aa   : > { %1112 = vperm.xlu1 %1987, %v1034_v18   ;;  %1907 = vmatprep.subr.bf16.mxu1 %v1999_v36  ;;  %v1068_v18 = vunpack.c.h.bf16 %v1049_v7 }
 0x3ac   : > { %1950 = vmatpush3.bf16.msra.mxu0 %v2004_v37  ;;  %v1071_v37 = vunpack.c.l.bf16 %v1051_v52 }
 0x3ad   : > { %1908 = vmatpush3.bf16.msra.mxu1 %v2000_v33  ;;  %1951 = vmatprep.subr.bf16.mxu0 %v2068_v2 }
 0x3ae   : > { %1117 = vperm.xlu1 %1987, %v1035_v57   ;;  %1909 = vmatprep.subr.bf16.mxu1 %v2002_v34 }
 0x3b0   : > { %1952 = vmatpush3.bf16.msra.mxu0 %v2007_v42  ;;  %v1056_v42 = vld [vmem:[%s2672_s0 + $0x48] sm:$0xff] }
 0x3b1   : > { %1910 = vmatpush3.bf16.msra.mxu1 %v2003_v38  ;;  %1953 = vmatprep.subr.bf16.mxu0 %v2068_v2  ;;  %v1077_v38 = vunpack.c.l.bf16 %v1054_v40 }
 0x3b2   : > { %1122 = vperm.xlu1 %1987, %v1036_v62   ;;  %1911 = vmatprep.subr.bf16.mxu1 %v2005_v41  ;;  %v1078_v41 = vunpack.c.h.bf16 %v1054_v40 }
 0x3b4   : > { %1954 = vmatpush3.bf16.msra.mxu0 %v2010_v0  ;;  %v1072_v0 = vunpack.c.h.bf16 %v1051_v52  ;;  %v2609_v52 = vld [vmem:[%s2672_s0 + $0x68] sm:$0xff] }
 0x3b5   : > { %1912 = vmatpush3.bf16.msra.mxu1 %v2006_v44  ;;  %1955 = vmatprep.subr.bf16.mxu0 %v2068_v2 }
 0x3b6   : > { %1127 = vperm.xlu1 %1987, %v1037_v48   ;;  %1913 = vmatprep.subr.bf16.mxu1 %v2008_v45  ;;  %v1091_v45 = vunpack.c.l.bf16 %v2581_v10 }
 0x3b8   : > { %1956 = vmatpush3.bf16.msra.mxu0 %v2013_v15 }
 0x3b9   : > { %1914 = vmatpush3.bf16.msra.mxu1 %v2009_v47  ;;  %1957 = vmatprep.subr.bf16.mxu0 %v2068_v2  ;;  %v1075_v47 = vunpack.c.l.bf16 %v1053_v26 }
 0x3ba   : > { %1132 = vperm.xlu1 %1987, %v1038_v60   ;;  %1915 = vmatprep.subr.bf16.mxu1 %v2011_v50 }
 0x3bc   : > { %1958 = vmatpush3.bf16.msra.mxu0 %v2014_v9  ;;  %v2593_v9 = vld [vmem:[%s2672_s0 + $0x50] sm:$0xff] }
 0x3bd   : > { %1916 = vmatpush3.bf16.msra.mxu1 %v2012_v53 }
 0x3be   : > { %1142 = vperm.xlu1 %1987, %v1040_v35   ;;  %1963 = vmatprep.subr.bf16.mxu1 %v2068_v2 }
 0x3bf   : > { %1960 = vmatmul.mubr.bf16.vlgmr.msra.gmra.mrb[4].mxu0 %v1319_v11  ;;  %v1092_v11 = vunpack.c.h.bf16 %v2581_v10 }
 0x3c2   : > { %1147 = vperm.xlu1 %1987, %v1041_v39  }
 0x3c6   : > { %1152 = vperm.xlu1 %1987, %v1042_v43  }
 0x3ca   : > { %1157 = vperm.xlu1 %1987, %v1043_v46  }
 0x3ce   : > { %1162 = vperm.xlu1 %1987, %v1044_v49   ;;  %v1055_v49 = vld [vmem:[%s2672_s0 + $0x40] sm:$0xff] }
 0x3cf   : > { %v1079_v63 = vunpack.c.l.bf16 %v1055_v49  ;;  %v1080_v44 = vunpack.c.h.bf16 %v1055_v49 }
 0x3d2   : > { %1172 = vperm.xlu1 %1987, %v1046_v51  }
 0x3d6   : > { %1731 = vrot.lane.b32.xlu1 %v364_v8, %s2072_s26  ;;  %v1076_v8 = vunpack.c.h.bf16 %v1053_v26 }
 0x41d   : > { %v1098_v13 = vpop.permute.xlu1 %1097 }
 0x41e   : > { %v1175_v4 = vmul.f32 %v1098_v13, %v1063_v19  ;;  %v1176_v1 = vmul.f32 %v1098_v13, %v1064_v58 }
 0x421   : > { %v1103_v16 = vpop.permute.xlu1 %1102 }
 0x422   : > { %v1177_v20 = vmul.f32 %v1103_v16, %v1065_v56  ;;  %v1178_v24 = vmul.f32 %v1103_v16, %v1066_v12  ;;  %v1081_v56 = vunpack.c.l.bf16 %v1056_v42 }
 0x424   : > { %v1207_v29 = vadd.f32 %v1177_v20, %v1175_v4  ;;  %v1214_v31 = vadd.f32 %v1178_v24, %v1176_v1  ;;  %v1138_v20 = vpop.permute.xlu0 %1137  ;;  %v1082_v24 = vunpack.c.h.bf16 %v1056_v42  ;;  %v1083_v4 = vunpack.c.l.bf16 %v2593_v9 }
 0x425   : > { %v1108_v22 = vpop.permute.xlu1 %1107  ;;  %v1090_v42 = vunpack.c.h.bf16 %v2609_v52 }
 0x426   : > { %v1208_v62 = vrot.slane %v1207_v29, 4  ;;  %v1215_v48 = vrot.slane %v1214_v31, 4  ;;  %v1179_v60 = vmul.f32 %v1108_v22, %v1067_v21  ;;  %v1180_v35 = vmul.f32 %v1108_v22, %v1068_v18 }
 0x428   : > { %v1209_v43 = vadd.f32 %v1208_v62, %v1207_v29  ;;  %v1216_v51 = vadd.f32 %v1215_v48, %v1214_v31  ;;  %v1058_v29 = vld [vmem:[%s2672_s0 + $0x58] sm:$0xff] }
 0x429   : > { %v1113_v30 = vpop.permute.xlu1 %1112 }
 0x42a   : > { %v1181_v25 = vmul.f32 %v1113_v30, %v1069_v59  ;;  %v1182_v57 = vmul.f32 %v1113_v30, %v1070_v27  ;;  %v1210_v36 = vrot.slane %v1209_v43, 2  ;;  %v1217_v34 = vrot.slane %v1216_v51, 2 }
 0x42c   : > { %v1221_v61 = vadd.f32 %v1181_v25, %v1179_v60  ;;  %v1228_v39 = vadd.f32 %v1182_v57, %v1180_v35  ;;  %v1211_v13 = vadd.f32 %v1210_v36, %v1209_v43  ;;  %v1218_v16 = vadd.f32 %v1217_v34, %v1216_v51  ;;  %v2604_v43 = vld [vmem:[%s2672_s0 + $0x60] sm:$0xff] }
 0x42d   : > { %v1118_v28 = vpop.permute.xlu1 %1117  ;;  %v1084_v25 = vunpack.c.h.bf16 %v2593_v9  ;;  %v1191_v57 = vmul.f32 %v1138_v20, %v1079_v63  ;;  %v1192_v60 = vmul.f32 %v1138_v20, %v1080_v44  ;;  %v2614_v63 = vld [vmem:[%s2672_s0 + $0x78] sm:$0xff]  ;;  %v1088_v34 = vunpack.c.h.bf16 %v2604_v43 }
 0x42e   : > { %v1222_v6 = vrot.slane %v1221_v61, 4  ;;  %v1229_v3 = vrot.slane %v1228_v39, 4  ;;  %v1183_v12 = vmul.f32 %v1118_v28, %v1071_v37  ;;  %v1184_v22 = vmul.f32 %v1118_v28, %v1072_v0 }
 0x42f   : > { %v1212_v30 = vrot.slane %v1211_v13, 1  ;;  %v1219_v62 = vrot.slane %v1218_v16, 1 }
 0x430   : > { %v1223_v50 = vadd.f32 %v1222_v6, %v1221_v61  ;;  %v1230_v15 = vadd.f32 %v1229_v3, %v1228_v39  ;;  %v1085_v61 = vunpack.c.l.bf16 %v1058_v29  ;;  %v1086_v39 = vunpack.c.h.bf16 %v1058_v29 }
 0x431   : > { %v1123_v46 = vpop.permute.xlu1 %1122  ;;  %v1213_v40 = vadd.f32 %v1212_v30, %v1211_v13  ;;  %v1220_v36 = vadd.f32 %v1219_v62, %v1218_v16  ;;  %v1094_v13 = vunpack.c.h.bf16 %v2614_v63 }
 0x432   : > { %v1185_v53 = vmul.f32 %v1123_v46, %v1073_v54  ;;  %v1186_v14 = vmul.f32 %v1123_v46, %v1074_v32  ;;  %v1224_v7 = vrot.slane %v1223_v50, 2  ;;  %v1231_v1 = vrot.slane %v1230_v15, 2 }
 0x434   : > { %v1235_v59 = vadd.f32 %v1185_v53, %v1183_v12  ;;  %v1242_v31 = vadd.f32 %v1186_v14, %v1184_v22  ;;  %v1225_v17 = vadd.f32 %v1224_v7, %v1223_v50  ;;  %v1232_v46 = vadd.f32 %v1231_v1, %v1230_v15  ;;  %v1168_v14 = vpop.permute.xlu0 %1167 }
 0x435   : > { %v1128_v33 = vpop.permute.xlu1 %1127  ;;  %v1093_v50 = vunpack.c.l.bf16 %v2614_v63  ;;  %v1336_v15 = vpack.c.bf16 %v1213_v40, %v1213_v40 }
 0x436   : > { %v1187_v23 = vmul.f32 %v1128_v33, %v1075_v47  ;;  %v1188_v27 = vmul.f32 %v1128_v33, %v1076_v8  ;;  %v1236_v49 = vrot.slane %v1235_v59, 4  ;;  %v1243_v6 = vrot.slane %v1242_v31, 4 }
 0x437   : > { %v1087_v33 = vunpack.c.l.bf16 %v2604_v43  ;;  %v1226_v44 = vrot.slane %v1225_v17, 1  ;;  %v1233_v0 = vrot.slane %v1232_v46, 1 }
 0x438   : > { %v1237_v47 = vadd.f32 %v1236_v49, %v1235_v59  ;;  %v1244_v53 = vadd.f32 %v1243_v6, %v1242_v31  ;;  %v1203_v59 = vmul.f32 %v1168_v14, %v1091_v45 }
 0x439   : > { %v1133_v55 = vpop.permute.xlu1 %1132 }
 0x43a   : > { %v1189_v19 = vmul.f32 %v1133_v55, %v1077_v38  ;;  %v1190_v58 = vmul.f32 %v1133_v55, %v1078_v41  ;;  %v1089_v41 = vunpack.c.l.bf16 %v2609_v52  ;;  %v1337_v55 = vpack.c.bf16 %v1220_v36, %v1220_v36 }
 0x43b   : > { %v1238_v7 = vrot.slane %v1237_v47, 2 }
 0x43c   : > { %v1249_v21 = vadd.f32 %v1189_v19, %v1187_v23  ;;  %v1256_v28 = vadd.f32 %v1190_v58, %v1188_v27  ;;  %v1227_v23 = vadd.f32 %v1226_v44, %v1225_v17  ;;  %v1245_v27 = vrot.slane %v1244_v53, 2 }
 0x43d   : > { %v1143_v18 = vpop.permute.xlu1 %1142 }
 0x43e   : > { %v1193_v48 = vmul.f32 %v1143_v18, %v1081_v56  ;;  %v1194_v35 = vmul.f32 %v1143_v18, %v1082_v24  ;;  %v1250_v3 = vrot.slane %v1249_v21, 4  ;;  %v1257_v32 = vrot.slane %v1256_v28, 4 }
 0x43f   : > { %v1234_v24 = vadd.f32 %v1233_v0, %v1232_v46  ;;  %v2628_v18 = vunpack.c.l.b16 %v1337_v55 }
 0x440   : > { %v1263_v51 = vadd.f32 %v1193_v48, %v1191_v57  ;;  %v1270_v54 = vadd.f32 %v1194_v35, %v1192_v60  ;;  %v1251_v8 = vadd.f32 %v1250_v3, %v1249_v21  ;;  %v1258_v56 = vadd.f32 %v1257_v32, %v1256_v28 }
 0x441   : > { %v1148_v26 = vpop.permute.xlu1 %1147  ;;  %v1204_v21 = vmul.f32 %v1168_v14, %v1092_v11  ;;  %v1338_v60 = vpack.c.bf16 %v1227_v23, %v1227_v23  ;;  %v1339_v35 = vpack.c.bf16 %v1234_v24, %v1234_v24 }
 0x442   : > { %v1264_v37 = vrot.slane %v1263_v51, 4  ;;  %v1271_v38 = vrot.slane %v1270_v54, 4  ;;  %v1195_v16 = vmul.f32 %v1148_v26, %v1083_v4  ;;  %v1196_v20 = vmul.f32 %v1148_v26, %v1084_v25 }
 0x443   : > { %v1252_v29 = vrot.slane %v1251_v8, 2  ;;  %v2626_v4 = vunpack.c.l.b16 %v1336_v15  ;;  %v1259_v57 = vrot.slane %v1258_v56, 2  ;;  %v1402_v26 = vunpack.c.l.b16 %v1338_v60 }
 0x444   : > { %v1265_v19 = vadd.f32 %v1264_v37, %v1263_v51  ;;  %v1272_v58 = vadd.f32 %v1271_v38, %v1270_v54  ;;  %v2630_v37 = vunpack.c.l.b16 %v1339_v35 }
 0x445   : > { %v1153_v9 = vpop.permute.xlu1 %1152  ;;  %v1253_v43 = vadd.f32 %v1252_v29, %v1251_v8  ;;  %v1260_v40 = vadd.f32 %v1259_v57, %v1258_v56 }
 0x446   : > { %v1197_v12 = vmul.f32 %v1153_v9, %v1085_v61  ;;  %v1198_v22 = vmul.f32 %v1153_v9, %v1086_v39  ;;  %v1266_v62 = vrot.slane %v1265_v19, 2  ;;  %v1273_v28 = vrot.slane %v1272_v58, 2 }
 0x447   : > { %v1239_v61 = vadd.f32 %v1238_v7, %v1237_v47  ;;  %v1246_v39 = vadd.f32 %v1245_v27, %v1244_v53 }
 0x448   : > { %v1277_v1 = vadd.f32 %v1197_v12, %v1195_v16  ;;  %v1284_v30 = vadd.f32 %v1198_v22, %v1196_v20  ;;  %v1267_v6 = vadd.f32 %v1266_v62, %v1265_v19  ;;  %v1274_v3 = vadd.f32 %v1273_v28, %v1272_v58 }
 0x449   : > { %v1158_v31 = vpop.permute.xlu1 %1157  ;;  %v1240_v38 = vrot.slane %v1239_v61, 1  ;;  %v1247_v44 = vrot.slane %v1246_v39, 1 }
 0x44a   : > { %v1278_v25 = vrot.slane %v1277_v1, 4  ;;  %v1285_v48 = vrot.slane %v1284_v30, 4  ;;  %v1199_v46 = vmul.f32 %v1158_v31, %v1087_v33  ;;  %v1200_v11 = vmul.f32 %v1158_v31, %v1088_v34 }
 0x44b   : > { %v1254_v33 = vrot.slane %v1253_v43, 1  ;;  %v1275_v8 = vrot.slane %v1274_v3, 1  ;;  %v1241_v12 = vadd.f32 %v1240_v38, %v1239_v61  ;;  %v1248_v19 = vadd.f32 %v1247_v44, %v1246_v39 }
 0x44c   : > { %v1279_v45 = vadd.f32 %v1278_v25, %v1277_v1  ;;  %v1286_v17 = vadd.f32 %v1285_v48, %v1284_v30 }
 0x44d   : > { %v1163_v49 = vpop.permute.xlu1 %1162  ;;  %v1255_v22 = vadd.f32 %v1254_v33, %v1253_v43  ;;  %v1276_v29 = vadd.f32 %v1275_v8, %v1274_v3  ;;  %v1340_v57 = vpack.c.bf16 %v1241_v12, %v1241_v12  ;;  %v1341_v62 = vpack.c.bf16 %v1248_v19, %v1248_v19 }
 0x44e   : > { %v1280_v10 = vrot.slane %v1279_v45, 2  ;;  %v1201_v51 = vmul.f32 %v1163_v49, %v1089_v41  ;;  %v1202_v52 = vmul.f32 %v1163_v49, %v1090_v42  ;;  %v1287_v54 = vrot.slane %v1286_v17, 2 }
 0x44f   : > { %v1261_v41 = vrot.slane %v1260_v40, 1  ;;  %v1268_v42 = vrot.slane %v1267_v6, 1  ;;  %v1342_v48 = vpack.c.bf16 %v1255_v22, %v1255_v22  ;;  %v1345_v39 = vpack.c.bf16 %v1276_v29, %v1276_v29 }
 0x450   : > { %v1281_v63 = vadd.f32 %v1280_v10, %v1279_v45  ;;  %v1291_v36 = vadd.f32 %v1201_v51, %v1199_v46  ;;  %v1298_v32 = vadd.f32 %v1202_v52, %v1200_v11  ;;  %v1288_v0 = vadd.f32 %v1287_v54, %v1286_v17 }
 0x451   : > { %v1173_v47 = vpop.permute.xlu1 %1172  ;;  %v1262_v1 = vadd.f32 %v1261_v41, %v1260_v40  ;;  %v1269_v27 = vadd.f32 %v1268_v42, %v1267_v6  ;;  %v1404_v11 = vunpack.c.l.b16 %v1340_v57  ;;  %v1405_v51 = vunpack.c.l.b16 %v1341_v62 }
 0x452   : > { %v1292_v15 = vrot.slane %v1291_v36, 4  ;;  %v1299_v53 = vrot.slane %v1298_v32, 4  ;;  %v1205_v34 = vmul.f32 %v1173_v47, %v1093_v50  ;;  %v1206_v9 = vmul.f32 %v1173_v47, %v1094_v13 }
 0x453   : > { %v1282_v14 = vrot.slane %v1281_v63, 1  ;;  %v1289_v58 = vrot.slane %v1288_v0, 1  ;;  %v1343_v61 = vpack.c.bf16 %v1262_v1, %v1262_v1  ;;  %v1344_v45 = vpack.c.bf16 %v1269_v27, %v1269_v27  ;;  %v2015_v1 = vld [vmem:[%s2680_s8] sm:$0xff]   ;;  %v2016_v27 = vld [vmem:[%s2680_s8 + $0x8] sm:$0xff]  }
 0x454   : > { %v1293_v55 = vadd.f32 %v1292_v15, %v1291_v36  ;;  %v1300_v56 = vadd.f32 %v1299_v53, %v1298_v32  ;;  %v1305_v16 = vadd.f32 %v1205_v34, %v1203_v59  ;;  %v1312_v20 = vadd.f32 %v1206_v9, %v1204_v21 }
 0x455   : > { %v1283_v30 = vadd.f32 %v1282_v14, %v1281_v63  ;;  %v1290_v28 = vadd.f32 %v1289_v58, %v1288_v0  ;;  %v1406_v6 = vunpack.c.l.b16 %v1342_v48  ;;  %v1416_v36 = vsel %vm734_vm4, %v1402_v26, %v2626_v4 }
 0x456   : > { %v1294_v23 = vrot.slane %v1293_v55, 2  ;;  %v1301_v24 = vrot.slane %v1300_v56, 2  ;;  %v1306_v7 = vrot.slane %v1305_v16, 4  ;;  %v1313_v50 = vrot.slane %v1312_v20, 4 }
 0x457   : > { %v1346_v17 = vpack.c.bf16 %v1283_v30, %v1283_v30  ;;  %v1347_v40 = vpack.c.bf16 %v1290_v28, %v1290_v28  ;;  %v1407_v32 = vunpack.c.l.b16 %v1343_v61  ;;  %v1408_v38 = vunpack.c.l.b16 %v1344_v45 }
 0x458   : > { %v1295_v31 = vadd.f32 %v1294_v23, %v1293_v55  ;;  %v1302_v25 = vadd.f32 %v1301_v24, %v1300_v56  ;;  %v1307_v13 = vadd.f32 %v1306_v7, %v1305_v16  ;;  %v1314_v59 = vadd.f32 %v1313_v50, %v1312_v20 }
 0x459   : > { %v1409_v0 = vunpack.c.l.b16 %v1345_v39  ;;  %v1410_v47 = vunpack.c.l.b16 %v1346_v17  ;;  %v1423_v33 = vsel %vm734_vm4, %v2630_v37, %v2628_v18  ;;  %v1417_v53 = vsel %vm736_vm5, %v1404_v11, %v1416_v36  ;;  %v1732_v11 = vpop.permute.xlu1 %1731 }
 0x45a   : > { %v1296_v60 = vrot.slane %v1295_v31, 1  ;;  %v1303_v35 = vrot.slane %v1302_v25, 1  ;;  %v1308_v21 = vrot.slane %v1307_v13, 2  ;;  %v1315_v43 = vrot.slane %v1314_v59, 2 }
 0x45b   : > { %v1411_v42 = vunpack.c.l.b16 %v1347_v40  ;;  %v1424_v9 = vsel %vm736_vm5, %v1405_v51, %v1423_v33  ;;  %v1418_v4 = vsel %vm738_vm6, %v1406_v6, %v1417_v53 }
 0x45c   : > { %v1297_v46 = vadd.f32 %v1296_v60, %v1295_v31  ;;  %v1309_v49 = vadd.f32 %v1308_v21, %v1307_v13  ;;  %v1304_v10 = vadd.f32 %v1303_v35, %v1302_v25  ;;  %v1316_v52 = vadd.f32 %v1315_v43, %v1314_v59  ;;  %v1855_v60 = vld [vmem:[%s2681_s9] ss:$0 sm:$0xff] }
 0x45d   : > { %v1425_v55 = vsel %vm738_vm6, %v1407_v32, %v1424_v9  ;;  %v1419_v56 = vsel %vm740_vm7, %v1408_v38, %v1418_v4 }
 0x45e   : > { %v1348_v3 = vpack.c.bf16 %v1297_v46, %v1297_v46  ;;  %v1310_v54 = vrot.slane %v1309_v49, 1  ;;  %v1349_v63 = vpack.c.bf16 %v1304_v10, %v1304_v10  ;;  %v1317_v44 = vrot.slane %v1316_v52, 1 }
 0x45f   : > { %v1426_v16 = vsel %vm740_vm7, %v1409_v0, %v1425_v55  ;;  %v1420_v37 = vsel %vm742_vm8, %v1410_v47, %v1419_v56 }
 0x460   : > { %v1311_v15 = vadd.f32 %v1310_v54, %v1309_v49  ;;  %v1412_v34 = vunpack.c.l.b16 %v1348_v3  ;;  %v1318_v41 = vadd.f32 %v1317_v44, %v1316_v52  ;;  %v1413_v8 = vunpack.c.l.b16 %v1349_v63 }
 0x461   : > { %v1427_v19 = vsel %vm742_vm8, %v1411_v42, %v1426_v16 }
 0x462   : > { %v1350_v14 = vpack.c.bf16 %v1311_v15, %v1311_v15  ;;  %v1351_v26 = vpack.c.bf16 %v1318_v41, %v1318_v41  ;;  %v1421_v58 = vsel %vm744_vm9, %v1412_v34, %v1420_v37  ;;  %v1428_v20 = vsel %vm744_vm9, %v1413_v8, %v1427_v19 }
 0x464   : > { %v1414_v18 = vunpack.c.l.b16 %v1350_v14  ;;  %v1415_v12 = vunpack.c.l.b16 %v1351_v26 }
 0x466   : > { %v1422_v22 = vsel %vm746_vm10, %v1414_v18, %v1421_v58  ;;  %v1429_v23 = vsel %vm746_vm10, %v1415_v12, %v1428_v20 }
 0x467   : > { %v1430_v24 = vpack.c.b16 %v1422_v22, %v1422_v22  ;;  %v1431_v7 = vpack.c.b16 %v1429_v23, %v1429_v23 }
 0x469   : > { %1562 = vmatprep.mubr.bf16.mxu1 %v1431_v7 }
 0x46a   : > { %1563 = vmatmul.mubr.bf16.vlgmr.msra.gmra.mrb[0].mxu1 %v1430_v24 }
 0x46b   : > { %1964 = vmatpush3.bf16.msra.mxu1 %v2015_v1  ;;  %1967 = vmatprep.mubr.msk.bf16.mxu1 %vm2069_vm1, %v2068_v2 }
 0x46c   : > { %1965 = vmatprep.subr.bf16.mxu1 %v2068_v2 }
 0x46f   : > { %1966 = vmatpush3.bf16.msra.mxu1 %v2016_v27 }
 0x472   : > { %1968 = vmatmul.mubr.msk.bf16.vlgmr.msra.gmra.mrb[4].mxu1 %vm389_vm2, %v2158_v5 }
 0x492   : > { %v1652_v29 = vpop.f32.mrb[4].mxu0 }
 0x493   : > { %v1961_v50 = vpop.f32.mrb[5].mxu0 }
 0x494   : > { %v1655_v30 = vpop.f32.mrb[6].mxu0 }
 0x495   : > { %v1962_v31 = vpop.f32.mrb[7].mxu0 }
 0x53d   : > { %v1917_v25 = vpop.f32.mrb[0].mxu1 }
 0x53e   : > { %v1918_v13 = vpop.f32.mrb[1].mxu1 }
 0x53f   : > { %v1919_v57 = vadd.f32 %v1918_v13, %v1917_v25  ;;  %v1920_v62 = vpop.f32.mrb[2].mxu1 }
 0x540   : > { %v1921_v28 = vpop.f32.mrb[3].mxu1 }
 0x541   : > { %v1653_v59 = vadd.f32 %v1919_v57, %v1652_v29 }
 0x545   : > { %v1708_v48 = vpop.f32.mrb[4].mxu1 }
 0x546   : > { %v1714_v2 = vadd.f32 %v1708_v48, %v1653_v59  ;;  %v1969_v35 = vpop.f32.mrb[5].mxu1 }
 0x547   : > { %v1711_v21 = vpop.f32.mrb[6].mxu1 }
 0x548   : > { %v1722_v61 = vadd.f32 %v1855_v60, %v1714_v2  ;;  %v1970_v5 = vpop.f32.mrb[7].mxu1 }
 0x54a   : > { %2051 = vtanh.f32 %v1722_v61  ;;  %v1856_v39 = vmul.f32 -1.442695, %v1722_v61 }
 0x54c   : > { %2053 = vpow2.f32 %v1856_v39 }
 0x554   : > { %v2052_v45 = vpop.eup %2051 }
 0x555   : > { %1736 = vrot.lane.b32.xlu0 %v2052_v45, %s2073_s14 }
 0x556   : > { %v2054_v43 = vpop.eup %2053 }
 0x557   : > { %v1726_v17 = vadd.f32 1.0, %v2054_v43 }
 0x559   : > { %2055 = vrcp.f32 %v1726_v17 }
 0x563   : > { %v2056_v46 = vpop.eup %2055 }
 0x564   : > { %v1734_v51 = vmul.f32 %v2056_v46, %v1732_v11 }
 0x5c7   : > { %v1737_v49 = vpop.permute.xlu0 %1736 }
 0x5c8   : > { %v1739_v10 = vmul.f32 %v2056_v46, %v1737_v49 }
 0x5ca   : > { %1741 = vrot.lane.b32.xlu0 %v1739_v10, %s2072_s26 }
 0x63c   : > { %v1742_v52 = vpop.permute.xlu0 %1741 }
 0x63d   : > { %v1744_v40 = vadd.f32 %v1742_v52, %v1734_v51 }
 0x63f   : > { %2057 = vtanh.f32 %v1744_v40 }
 0x649   : > { %v2058_v6 = vpop.eup %2057 }
 0x64a   : > { %1747 = vrot.lane.b32.xlu1 %v2058_v6, %s2073_s14 }
 0x64e   : > { %1757 = vrot.lane.b32.xlu1 %v1744_v40, %s2074_s15 }
 0x6bc   : > { %v1748_v3 = vpop.permute.xlu1 %1747 }
 0x6bd   : > { %v1750_v54 = vmul.f32 %v2056_v46, %v1748_v3 }
 0x6bf   : > { %1752 = vrot.lane.b32.xlu0 %v1750_v54, %s2072_s26 }
 0x6c0   : > { %v1758_v63 = vpop.permute.xlu1 %1757 }
 0x6c1   : > { %1760 = vst.msk [vmem:[#allocation3] sm:$0xff] %vm389_vm2, %v1758_v63 }
 0x731   : > { %v1753_v36 = vpop.permute.xlu0 %1752 }
 0x732   : > { %1755 = vst.msk [vmem:[#allocation2] sm:$0xff] %vm389_vm2, %v1753_v36  ;;  %1761 = vst.msk [vmem:[%s2146_s23] sm:$0xff] %vm389_vm2, %v1753_v36 }
 0x733 PF: > { %s20_s13 = sadd.s32 1, %s2065_s13  }
 0x734   : > { %p17_p5 = scmp.ge.s32.totalorder %s20_s13, 10  }
 0x736   :  { %19 = sbr.rel (!%p17_p5) target bundleno = 1 (0x1), region = 94 }

</bundles_post_ra>
